<compile_context>
chip_gen: v5e
topology: v5e:2x2
jax: 0.10.0
libtpu: 0.0.40
codegen_flags: <defaults>
</compile_context>

<pallas_src>
import functools

import jax
import jax.numpy as jnp
from jax.experimental import pallas as pl
from jax.experimental.pallas import tpu as pltpu


def _mean_variance_norm(x, eps=1e-5):
    """x: (B, C, HW). Matches torch .var(dim=2) (unbiased) with eps under sqrt."""
    n = x.shape[-1]
    mean = jnp.mean(x, axis=-1, keepdims=True)
    d = x - mean
    var = jnp.sum(d * d, axis=-1, keepdims=True) / max(n - 1, 1)
    return d * jax.lax.rsqrt(var + eps)


def _round_up(x, m):
    return ((x + m - 1) // m) * m


# Contract the last dim of both operands (used only for the once-per-q-tile
# out_conv epilogue; the per-kv-step PV matmul is a plain NN dot on H^T).
_NT_DIMS = (((1,), (1,)), ((), ()))


# ----------------------------------------------------------------------------
# Kernels
# ----------------------------------------------------------------------------
def _sanet_attn_single_kernel(ft_ref, g_ref, ht_ref, c_ref, wout_ref, out_ref,
                              *, hw_s, masked):
    """Single kv-pass path: G / H^T are fully resident (grid = (B, nq))."""
    ft = ft_ref[0]                     # (tq, C)   queries on rows
    g = g_ref[0]                       # (C, tkv)
    ht = ht_ref[0]                     # (tkv, C)  values, pre-transposed

    s = jnp.dot(ft, g, preferred_element_type=jnp.float32)        # (tq, tkv)
    if masked:
        col = jax.lax.broadcasted_iota(jnp.int32, s.shape, 1)
        s = jnp.where(col < hw_s, s, -jnp.inf)                    # pad columns

    m = jnp.max(s, axis=-1, keepdims=True)
    p = jnp.exp(s - m)
    l = jnp.sum(p, axis=-1, keepdims=True)
    inv_l = pl.reciprocal(l, approx=True)                         # EUP slot
    o = jnp.dot(p.astype(ht.dtype), ht,
                preferred_element_type=jnp.float32)               # (tq, C)
    o = (o * inv_l).astype(wout_ref.dtype)
    # out[c_out, q] = sum_c wout[c_out, c] * o[q, c]
    out = jax.lax.dot_general(wout_ref[...], o, _NT_DIMS,
                              preferred_element_type=jnp.float32)  # (C, tq)
    out_ref[0] = (out + c_ref[0]).astype(out_ref.dtype)


def _sanet_attn_flash_kernel(ft_ref, g_ref, ht_ref, c_ref, wout_ref, out_ref,
                             m_sc, l_sc, acc_sc, *, hw_s, tk, masked):
    """Flash / online-softmax fallback when G, H do not fit VMEM resident."""
    ki = pl.program_id(2)

    @pl.when(ki == 0)
    def _init():
        m_sc[...] = jnp.full_like(m_sc, -jnp.inf)
        l_sc[...] = jnp.zeros_like(l_sc)
        acc_sc[...] = jnp.zeros_like(acc_sc)

    ft = ft_ref[0]                     # (tq, C)
    g = g_ref[0]                       # (C, tk)
    ht = ht_ref[0]                     # (tk, C)

    s = jnp.dot(ft, g, preferred_element_type=jnp.float32)        # (tq, tk)
    if masked:
        col = ki * tk + jax.lax.broadcasted_iota(jnp.int32, s.shape, 1)
        s = jnp.where(col < hw_s, s, -jnp.inf)

    m_prev = m_sc[...]                                             # (tq, 1)
    m_new = jnp.maximum(m_prev, jnp.max(s, axis=-1, keepdims=True))
    alpha = jnp.exp(m_prev - m_new)
    p = jnp.exp(s - m_new)

    l_sc[...] = alpha * l_sc[...] + jnp.sum(p, axis=-1, keepdims=True)
    acc_sc[...] = alpha * acc_sc[...] + jnp.dot(
        p.astype(ht.dtype), ht, preferred_element_type=jnp.float32)
    m_sc[...] = m_new

    @pl.when(ki == pl.num_programs(2) - 1)
    def _finalize():
        inv_l = pl.reciprocal(l_sc[...], approx=True)
        o = (acc_sc[...] * inv_l).astype(wout_ref.dtype)           # (tq, C)
        out = jax.lax.dot_general(wout_ref[...], o, _NT_DIMS,
                                  preferred_element_type=jnp.float32)
        out_ref[0] = (out + c_ref[0]).astype(out_ref.dtype)


# ----------------------------------------------------------------------------
# Tiling / VMEM planning
# ----------------------------------------------------------------------------
def _vmem_limit_bytes():
    """Generation-aware VMEM budget; leave headroom for Mosaic scratch."""
    cap = None
    try:
        cap = int(pltpu.get_tpu_info().vmem_capacity_bytes)
    except Exception:
        cap = None
    if cap is None:
        return 48 * 1024 * 1024                 # conservative: fits v7x too
    if cap <= 64 * 1024 * 1024:                 # v7x: 64 MiB physical
        return max(cap - 12 * 1024 * 1024, 32 * 1024 * 1024)
    # v5e / v6e: 128 MiB physical -> use ~110 MiB
    return min(cap - 20 * 1024 * 1024, 110 * 1024 * 1024)


def _tile_candidates(total, cap):
    """Multiples of 128 that divide `total`, largest first."""
    cands = [t for t in range(128, min(total, cap) + 1, 128) if total % t == 0]
    return sorted(set(cands), reverse=True) or [total]


def _plan_tiles(B, C, hw_c_pad, hw_s_pad, mm_bytes, out_bytes, budget):
    tq_cands = _tile_candidates(hw_c_pad, cap=4096)

    def ok_parallel(tq):
        # Keep >= 2 parallel grid units for v7x's two TensorCores when possible.
        if B >= 2:
            return True
        return (hw_c_pad // tq) >= 2 or hw_c_pad == 128

    def resident_cost(tq):
        return (2 * 2 * C * hw_s_pad * mm_bytes     # G + H^T (double-buffered)
                + 2 * tq * C * mm_bytes             # F^T tile
                + 2 * C * tq * 4                    # residual (f32)
                + 2 * C * C * mm_bytes              # w_out
                + 2 * C * tq * out_bytes            # output tile
                + 2 * tq * hw_s_pad * 4)            # score / probs temporaries

    # Preferred: G/H resident, single kv pass.
    for tq in tq_cands:
        if not ok_parallel(tq):
            continue
        if resident_cost(tq) <= budget:
            return tq, hw_s_pad

    # Fallback: flash-tile kv; biggest tq first (it divides G/H re-streaming).
    tk_cands = _tile_candidates(hw_s_pad, cap=2048)
    for tq in tq_cands:
        if not ok_parallel(tq):
            continue
        for tk in tk_cands:
            cost = (2 * 2 * C * tk * mm_bytes
                    + 2 * tq * C * mm_bytes
                    + 2 * C * tq * 4
                    + 2 * C * C * mm_bytes
                    + 2 * C * tq * out_bytes
                    + tq * C * 4 + 2 * tq * 4       # acc / m / l scratch
                    + 2 * tq * tk * 4)              # score / probs temporaries
            if cost <= budget:
                return tq, tk
    return 128, 128


# ----------------------------------------------------------------------------
# Forward pass
# ----------------------------------------------------------------------------
@functools.partial(jax.jit, static_argnums=(3, 4, 5, 6, 7))
def _sanet_forward_impl(content, style, params, tq, tk, matmul_dtype,
                        out_dtype, vmem_limit):
    wf, bf, wg, bg, wh, bh, wout, bout = params
    B, C, Hc, Wc = content.shape
    _, _, Hs, Ws = style.shape
    hw_c, hw_s = Hc * Wc, Hs * Ws
    hw_c_pad = _round_up(hw_c, 128)
    hw_s_pad = _round_up(hw_s, 128)

    c_flat = content.reshape(B, C, hw_c).astype(jnp.float32)
    s_flat = style.reshape(B, C, hw_s).astype(jnp.float32)

    # Global-spatial norm + 1x1 convs stay in XLA (cheap channel-mixing
    # matmuls).  F and H are emitted pre-transposed so the kernel only uses
    # plain NN matmuls on the per-kv-step path.
    nc = _mean_variance_norm(c_flat)
    ns = _mean_variance_norm(s_flat)
    F_t = jnp.einsum('oc,bcn->bno', wf, nc) + bf[None, None, :]     # (B,HWc,C)
    G = jnp.einsum('oc,bcn->bon', wg, ns) + bg[None, :, None]       # (B,C,HWs)
    H_t = jnp.einsum('oc,bcn->bno', wh, s_flat) + bh[None, None, :]  # (B,HWs,C)

    # Fold the out_conv bias into the residual (lane-dense, no (C,1) operand).
    resid = c_flat + bout[None, :, None]                            # (B,C,HWc)

    # Pad spatial axes up to multiples of 128 (padded kv columns get masked
    # in-kernel; padded q rows are sliced off after the call).
    if hw_c_pad > hw_c:
        F_t = jnp.pad(F_t, ((0, 0), (0, hw_c_pad - hw_c), (0, 0)))
        resid = jnp.pad(resid, ((0, 0), (0, 0), (0, hw_c_pad - hw_c)))
    if hw_s_pad > hw_s:
        G = jnp.pad(G, ((0, 0), (0, 0), (0, hw_s_pad - hw_s)))
        H_t = jnp.pad(H_t, ((0, 0), (0, hw_s_pad - hw_s), (0, 0)))

    F_t = F_t.astype(matmul_dtype)
    G = G.astype(matmul_dtype)
    H_t = H_t.astype(matmul_dtype)
    wout_m = wout.astype(matmul_dtype)

    mm_bytes = jnp.dtype(matmul_dtype).itemsize
    out_bytes = jnp.dtype(out_dtype).itemsize
    nq = hw_c_pad // tq
    nk = hw_s_pad // tk
    masked = hw_s_pad != hw_s

    flops = 2 * B * C * hw_c_pad * (2 * hw_s_pad + C)
    gh_stream = 1 if nk == 1 else nq     # G/H resident vs re-streamed per q-tile
    bytes_accessed = (
        F_t.size * mm_bytes
        + gh_stream * (G.size + H_t.size) * mm_bytes
        + resid.size * 4
        + wout_m.size * mm_bytes
        + B * C * hw_c_pad * out_bytes)

    if nk == 1:
        # Resident G/H^T: their index maps are invariant over (qi), so Pallas
        # keeps them in VMEM across all q-tiles of a batch element.
        kernel = functools.partial(_sanet_attn_single_kernel,
                                   hw_s=hw_s, masked=masked)
        grid = (B, nq)
        in_specs = [
            pl.BlockSpec((1, tq, C), lambda b, qi: (b, qi, 0)),        # F^T
            pl.BlockSpec((1, C, hw_s_pad), lambda b, qi: (b, 0, 0)),   # G
            pl.BlockSpec((1, hw_s_pad, C), lambda b, qi: (b, 0, 0)),   # H^T
            pl.BlockSpec((1, C, tq), lambda b, qi: (b, 0, qi)),        # resid+b
            pl.BlockSpec((C, C), lambda b, qi: (0, 0)),                # w_out
        ]
        out_spec = pl.BlockSpec((1, C, tq), lambda b, qi: (b, 0, qi))
        scratch = []
        dim_sem = ("parallel", "parallel")
    else:
        # TODO(synk): on v7x, w_out could use pipeline_mode=pl.Buffered(1)
        # (constant index map -> second buffer is wasted VMEM).
        kernel = functools.partial(_sanet_attn_flash_kernel,
                                   hw_s=hw_s, tk=tk, masked=masked)
        grid = (B, nq, nk)
        in_specs = [
            pl.BlockSpec((1, tq, C), lambda b, qi, ki: (b, qi, 0)),    # F^T
            pl.BlockSpec((1, C, tk), lambda b, qi, ki: (b, 0, ki)),    # G
            pl.BlockSpec((1, tk, C), lambda b, qi, ki: (b, ki, 0)),    # H^T
            pl.BlockSpec((1, C, tq), lambda b, qi, ki: (b, 0, qi)),    # resid+b
            pl.BlockSpec((C, C), lambda b, qi, ki: (0, 0)),            # w_out
        ]
        out_spec = pl.BlockSpec((1, C, tq), lambda b, qi, ki: (b, 0, qi))
        scratch = [
            pltpu.VMEM((tq, 1), jnp.float32),    # running max m
            pltpu.VMEM((tq, 1), jnp.float32),    # running denom l
            pltpu.VMEM((tq, C), jnp.float32),    # output accumulator
        ]
        dim_sem = ("parallel", "parallel", "arbitrary")

    out_padded = pl.pallas_call(
        kernel,
        out_shape=jax.ShapeDtypeStruct((B, C, hw_c_pad), out_dtype),
        grid_spec=pltpu.PrefetchScalarGridSpec(
            num_scalar_prefetch=0,
            grid=grid,
            in_specs=in_specs,
            out_specs=out_spec,
            scratch_shapes=scratch,
        ),
        compiler_params=pltpu.CompilerParams(
            dimension_semantics=dim_sem,
            vmem_limit_bytes=int(vmem_limit),
        ),
        cost_estimate=pl.CostEstimate(
            flops=int(flops),
            transcendentals=int(B * hw_c_pad * hw_s_pad),
            bytes_accessed=int(bytes_accessed),
        ),
    )(F_t, G, H_t, resid, wout_m)

    return out_padded[:, :, :hw_c].reshape(B, C, Hc, Wc)


def sanet_forward(content, style, params, *, tq=None, tk=None,
                  matmul_dtype=jnp.bfloat16, out_dtype=jnp.float32):
    """SANet forward. out_dtype=jnp.bfloat16 halves HBM writeback if the
    consumer tolerates it (the in-kernel accumulate/residual stays f32)."""
    B, C, Hc, Wc = content.shape
    _, _, Hs, Ws = style.shape
    hw_c_pad = _round_up(Hc * Wc, 128)
    hw_s_pad = _round_up(Hs * Ws, 128)

    vmem_limit = _vmem_limit_bytes()
    if tq is None or tk is None:
        budget = int(vmem_limit * 0.8)
        ptq, ptk = _plan_tiles(B, C, hw_c_pad, hw_s_pad,
                               jnp.dtype(matmul_dtype).itemsize,
                               jnp.dtype(out_dtype).itemsize, budget)
        tq = ptq if tq is None else tq
        tk = ptk if tk is None else tk

    assert hw_c_pad % tq == 0 and tq % 128 == 0, (tq, hw_c_pad)
    assert hw_s_pad % tk == 0 and tk % 128 == 0, (tk, hw_s_pad)

    return _sanet_forward_impl(content, style, params, int(tq), int(tk),
                               matmul_dtype, out_dtype, int(vmem_limit))


# ----------------------------------------------------------------------------
# Pure-JAX reference + params
# ----------------------------------------------------------------------------
def sanet_reference(content, style, params):
    """Pure-f32 JAX reference mirroring the PyTorch SANet.forward."""
    wf, bf, wg, bg, wh, bh, wout, bout = params
    B, C, Hc, Wc = content.shape
    _, _, Hs, Ws = style.shape
    cf = content.reshape(B, C, Hc * Wc)
    sf = style.reshape(B, C, Hs * Ws)
    F = jnp.einsum('oc,bcn->bon', wf, _mean_variance_norm(cf)) + bf[None, :, None]
    G = jnp.einsum('oc,bcn->bon', wg, _mean_variance_norm(sf)) + bg[None, :, None]
    H = jnp.einsum('oc,bcn->bon', wh, sf) + bh[None, :, None]
    S = jax.nn.softmax(jnp.einsum('bcm,bcn->bmn', F, G), axis=-1)
    O = jnp.einsum('bcn,bmn->bcm', H, S)
    O = jnp.einsum('oc,bcn->bon', wout, O) + bout[None, :, None]
    return (O + cf).reshape(B, C, Hc, Wc)


def init_params(key, C):
    ks = jax.random.split(key, 8)
    scale = 1.0 / jnp.sqrt(C)
    wf = jax.random.uniform(ks[0], (C, C), jnp.float32, -scale, scale)
    bf = jax.random.uniform(ks[1], (C,), jnp.float32, -scale, scale)
    wg = jax.random.uniform(ks[2], (C, C), jnp.float32, -scale, scale)
    bg = jax.random.uniform(ks[3], (C,), jnp.float32, -scale, scale)
    wh = jax.random.uniform(ks[4], (C, C), jnp.float32, -scale, scale)
    bh = jax.random.uniform(ks[5], (C,), jnp.float32, -scale, scale)
    wout = jax.random.uniform(ks[6], (C, C), jnp.float32, -scale, scale)
    bout = jax.random.uniform(ks[7], (C,), jnp.float32, -scale, scale)
    return (wf, bf, wg, bg, wh, bh, wout, bout)


if __name__ == "__main__":
    B, C, Hc, Wc = 2, 32, 16, 16   # content
    Hs, Ws = 16, 16                # style

    key = jax.random.PRNGKey(0)
    k_c, k_s, k_p = jax.random.split(key, 3)
    content = jax.random.normal(k_c, (B, C, Hc, Wc), jnp.float32)
    style = jax.random.normal(k_s, (B, C, Hs, Ws), jnp.float32)
    params = init_params(k_p, C)

    ref = sanet_reference(content, style, params)

    # 1) Default: bf16 MXU operands, auto tiles -> resident G/H^T single-pass
    #    softmax (grid = (B, nq)).
    out = jax.block_until_ready(sanet_forward(content, style, params))
    assert out.shape == (B, C, Hc, Wc)
    assert jnp.allclose(out, ref, atol=1e-1, rtol=1e-1), \
        float(jnp.max(jnp.abs(out - ref)))

    # 2) f32 MXU, auto tiles -> tight numerical check of the resident path.
    out_f32 = jax.block_until_ready(
        sanet_forward(content, style, params, matmul_dtype=jnp.float32))
    assert jnp.allclose(out_f32, ref, atol=3e-3, rtol=3e-3), \
        float(jnp.max(jnp.abs(out_f32 - ref)))

    # 3) f32 MXU, forced tq=tk=128 -> exercises the flash / online-softmax
    #    fallback (grid = (B, 2, 2)).
    out_flash = jax.block_until_ready(
        sanet_forward(content, style, params, tq=128, tk=128,
                      matmul_dtype=jnp.float32))
    assert jnp.allclose(out_flash, ref, atol=3e-3, rtol=3e-3), \
        float(jnp.max(jnp.abs(out_flash - ref)))

    # 4) Non-128-aligned spatial sizes -> exercises padding + kv masking
    #    (content 16x13=208 -> pad 256, style 12x12=144 -> pad 256).
    content2 = jax.random.normal(k_c, (B, C, 16, 13), jnp.float32)
    style2 = jax.random.normal(k_s, (B, C, 12, 12), jnp.float32)
    ref2 = sanet_reference(content2, style2, params)
    out2 = jax.block_until_ready(
        sanet_forward(content2, style2, params, matmul_dtype=jnp.float32))
    assert jnp.allclose(out2, ref2, atol=3e-3, rtol=3e-3), \
        float(jnp.max(jnp.abs(out2 - ref2)))

    # 5) Padded sizes through the flash fallback (masked last kv tile).
    out2f = jax.block_until_ready(
        sanet_forward(content2, style2, params, tq=128, tk=128,
                      matmul_dtype=jnp.float32))
    assert jnp.allclose(out2f, ref2, atol=3e-3, rtol=3e-3), \
        float(jnp.max(jnp.abs(out2f - ref2)))

    print("KERNEL_OK")
</pallas_src>

<mosaic_0001>
module attributes {stable_mosaic.version = 11 : i64} {
  func.func @_sanet_attn_single_kernel(%arg0: i32, %arg1: i32, %arg2: memref<1x256x32xbf16, #tpu.memory_space<vmem>>, %arg3: memref<1x32x256xbf16, #tpu.memory_space<vmem>>, %arg4: memref<1x256x32xbf16, #tpu.memory_space<vmem>>, %arg5: memref<1x32x256xf32, #tpu.memory_space<vmem>>, %arg6: memref<32x32xbf16, #tpu.memory_space<vmem>>, %arg7: memref<1x32x256xf32, #tpu.memory_space<vmem>>) attributes {dimension_semantics = [#tpu.dimension_semantics<parallel>, #tpu.dimension_semantics<parallel>], iteration_bounds = array<i64: 2, 1>, scalar_prefetch = 0 : i64, scratch_operands = 0 : i64, tpu.core_type = #tpu.core_type<tc>, window_params = [{transform_indices = @transform_0, window_bounds = array<i64: 1, 256, 32>}, {transform_indices = @transform_1, window_bounds = array<i64: 1, 32, 256>}, {transform_indices = @transform_2, window_bounds = array<i64: 1, 256, 32>}, {transform_indices = @transform_3, window_bounds = array<i64: 1, 32, 256>}, {pipeline_mode = #tpu.pipeline_mode<synchronous>, transform_indices = @transform_4, window_bounds = array<i64: 32, 32>}, {transform_indices = @transform_5, window_bounds = array<i64: 1, 32, 256>}]} {
    %c0 = arith.constant 0 : index
    %c0_0 = arith.constant 0 : index
    %c0_1 = arith.constant 0 : index
    %0 = vector.load %arg2[%c0, %c0_0, %c0_1] : memref<1x256x32xbf16, #tpu.memory_space<vmem>>, vector<1x256x32xbf16>
    %1 = vector.shape_cast %0 : vector<1x256x32xbf16> to vector<256x32xbf16>
    %c0_2 = arith.constant 0 : index
    %c0_3 = arith.constant 0 : index
    %c0_4 = arith.constant 0 : index
    %2 = vector.load %arg3[%c0_2, %c0_3, %c0_4] : memref<1x32x256xbf16, #tpu.memory_space<vmem>>, vector<1x32x256xbf16>
    %3 = vector.shape_cast %2 : vector<1x32x256xbf16> to vector<32x256xbf16>
    %c0_5 = arith.constant 0 : index
    %c0_6 = arith.constant 0 : index
    %c0_7 = arith.constant 0 : index
    %4 = vector.load %arg4[%c0_5, %c0_6, %c0_7] : memref<1x256x32xbf16, #tpu.memory_space<vmem>>, vector<1x256x32xbf16>
    %5 = vector.shape_cast %4 : vector<1x256x32xbf16> to vector<256x32xbf16>
    %cst = arith.constant dense<0.000000e+00> : vector<256x256xf32>
    %6 = tpu.matmul %1, %3, %cst {dimension_numbers = #tpu.dot_dimension_numbers<[1], [0], [0], [1], [0, 0, 1, 1], [], []>} : vector<256x32xbf16>, vector<32x256xbf16>, vector<256x256xf32> -> vector<256x256xf32>
    %cst_8 = arith.constant dense<0xFF800000> : vector<256xf32>
    %7 = vector.multi_reduction <maximumf>, %6, %cst_8 [1] : vector<256x256xf32> to vector<256xf32>
    %8 = vector.shape_cast %7 : vector<256xf32> to vector<256x1xf32>
    %9 = vector.broadcast %8 : vector<256x1xf32> to vector<256x256xf32>
    %10 = arith.subf %6, %9 : vector<256x256xf32>
    %11 = math.exp %10 : vector<256x256xf32>
    %cst_9 = arith.constant dense<0.000000e+00> : vector<256xf32>
    %12 = vector.multi_reduction <add>, %11, %cst_9 [1] : vector<256x256xf32> to vector<256xf32>
    %13 = vector.shape_cast %12 : vector<256xf32> to vector<256x1xf32>
    %14 = tpu.reciprocal %13 {approx = true} : vector<256x1xf32> -> vector<256x1xf32>
    %15 = arith.truncf %11 : vector<256x256xf32> to vector<256x256xbf16>
    %cst_10 = arith.constant dense<0.000000e+00> : vector<256x32xf32>
    %16 = tpu.matmul %15, %5, %cst_10 {dimension_numbers = #tpu.dot_dimension_numbers<[1], [0], [0], [1], [0, 0, 1, 1], [], []>} : vector<256x256xbf16>, vector<256x32xbf16>, vector<256x32xf32> -> vector<256x32xf32>
    %17 = vector.broadcast %14 : vector<256x1xf32> to vector<256x32xf32>
    %18 = arith.mulf %16, %17 : vector<256x32xf32>
    %19 = arith.truncf %18 : vector<256x32xf32> to vector<256x32xbf16>
    %c0_11 = arith.constant 0 : index
    %c0_12 = arith.constant 0 : index
    %20 = vector.load %arg6[%c0_11, %c0_12] : memref<32x32xbf16, #tpu.memory_space<vmem>>, vector<32x32xbf16>
    %cst_13 = arith.constant dense<0.000000e+00> : vector<32x256xf32>
    %21 = tpu.matmul %20, %19, %cst_13 {dimension_numbers = #tpu.dot_dimension_numbers<[1], [1], [0], [0], [0, 0, 1, 0], [], []>} : vector<32x32xbf16>, vector<256x32xbf16>, vector<32x256xf32> -> vector<32x256xf32>
    %c0_14 = arith.constant 0 : index
    %c0_15 = arith.constant 0 : index
    %c0_16 = arith.constant 0 : index
    %22 = vector.load %arg5[%c0_14, %c0_15, %c0_16] : memref<1x32x256xf32, #tpu.memory_space<vmem>>, vector<1x32x256xf32>
    %23 = vector.shape_cast %22 : vector<1x32x256xf32> to vector<32x256xf32>
    %24 = arith.addf %21, %23 : vector<32x256xf32>
    %c0_17 = arith.constant 0 : index
    %c0_18 = arith.constant 0 : index
    %c0_19 = arith.constant 0 : index
    %25 = vector.load %arg7[%c0_17, %c0_18, %c0_19] : memref<1x32x256xf32, #tpu.memory_space<vmem>>, vector<1x32x256xf32>
    %26 = vector.shape_cast %25 : vector<1x32x256xf32> to vector<32x256xf32>
    %27 = vector.shape_cast %24 : vector<32x256xf32> to vector<1x32x256xf32>
    tpu.vector_store %arg7[%c0_17, %c0_18, %c0_19], %27 {strides = array<i32>} : memref<1x32x256xf32, #tpu.memory_space<vmem>>, vector<1x32x256xf32>,
    return
  }
  func.func @transform_0(%arg0: i32, %arg1: i32) -> (i32, i32, i32) {
    %c0_i32 = arith.constant 0 : i32
    %c0_i32_0 = arith.constant 0 : i32
    return %arg0, %arg1, %c0_i32 : i32, i32, i32
  }
  func.func @transform_1(%arg0: i32, %arg1: i32) -> (i32, i32, i32) {
    %c0_i32 = arith.constant 0 : i32
    %c0_i32_0 = arith.constant 0 : i32
    %c0_i32_1 = arith.constant 0 : i32
    return %arg0, %c0_i32, %c0_i32_0 : i32, i32, i32
  }
  func.func @transform_2(%arg0: i32, %arg1: i32) -> (i32, i32, i32) {
    %c0_i32 = arith.constant 0 : i32
    %c0_i32_0 = arith.constant 0 : i32
    %c0_i32_1 = arith.constant 0 : i32
    return %arg0, %c0_i32, %c0_i32_0 : i32, i32, i32
  }
  func.func @transform_3(%arg0: i32, %arg1: i32) -> (i32, i32, i32) {
    %c0_i32 = arith.constant 0 : i32
    %c0_i32_0 = arith.constant 0 : i32
    return %arg0, %c0_i32, %arg1 : i32, i32, i32
  }
  func.func @transform_4(%arg0: i32, %arg1: i32) -> (i32, i32) {
    %c0_i32 = arith.constant 0 : i32
    %c0_i32_0 = arith.constant 0 : i32
    %c0_i32_1 = arith.constant 0 : i32
    return %c0_i32, %c0_i32_0 : i32, i32
  }
  func.func @transform_5(%arg0: i32, %arg1: i32) -> (i32, i32, i32) {
    %c0_i32 = arith.constant 0 : i32
    %c0_i32_0 = arith.constant 0 : i32
    return %arg0, %c0_i32, %arg1 : i32, i32, i32
  }
}

</mosaic_0001>

<bundles_post_ra>
// kernel: _sanet_forward_impl.1
= control target key start
LH: loop header
LB: loop body
LE: loop exit
PB: predicated region body
PF: predicated region fallthrough
CT: control target
= control target key end

     0   :  { %s2275_s18 = smov 0   ;;  %s2277_s19 = smov 0   ;;  %s2876_s0 = inlined_call_operand.vmem [shape: bf16[2,256,32], index: 0, kind: input, shape index: {}]   ;;  %s2877_s1 = inlined_call_operand.vmem [shape: bf16[2,32,256], index: 1, kind: input, shape index: {}]   ;;  %s2878_s2 = inlined_call_operand.vmem [shape: bf16[2,256,32], index: 2, kind: input, shape index: {}]   ;;  %s2879_s3 = inlined_call_operand.vmem [shape: f32[2,32,256], index: 3, kind: input, shape index: {}]   ;;  %s2880_s4 = inlined_call_operand.vmem [shape: bf16[32,32], index: 4, kind: input, shape index: {}]   ;;  %s2881_s5 = inlined_call_operand.vmem [shape: f32[2,32,256], index: 5, kind: output, shape index: {}]  }
   0x1   :  { %s2279_s20 = smov 0  }
   0x2 LB: > { %s27_s21 = sadd.s32 1, %s2239_s19  ;;  %p1761_p0 = scmp.ge.s32.totalorder %s2243_s20, 1  ;;  %s2243_s20 = sphi %s2279_s20, %s15_s20   ;;  %s2239_s19 = sphi %s2277_s19, %s2883_s19   ;;  %s2235_s18 = sphi %s2275_s18, %s2882_s18  }
   0x3   : > { %p29_p1 = scmp.ge.s32.totalorder %s27_s21, 2  ;;  %p245_p2 = scmp.lt.s32.totalorder %s2243_s20, 3 }
   0x5   : > { %s2885_s21 = smov (%p29_p1, %s27_s21), 0  ;;  %p246_p3 = pnand %p1761_p0, %p245_p2 }
   0x6   : > { %p301_p4 = scmp.lt.s32.totalorder (!%p246_p3), %s2235_s18, 1 }
   0x7   : > { %249 = sbr.rel (%p246_p3) target bundleno = 896 (0x380), region = 40 }
   0xc   : > { %s2887_s18 = smov (!%p301_p4, %s2235_s18), 1  ;;  %vm509_vm0 = vcmask 261120  }
   0xd   : > { %s1963_s22 = sshll.u32 %s2887_s18, 5  ;;  %s1962_s23 = sshll.u32 %s2887_s18, 7 }
   0xe   : > { %s314_s26 = scalar_lea.vmem %s2877_s1, %s1963_s22  ;;  %s2305_s29 = scalar_lea.vmem %s2876_s0, %s1962_s23 }
   0xf   : > { %v1846_v0 = vld [vmem:[%s314_s26 + $0x10] sm:$0xf]  ;;  %v1986_v1 = vld [vmem:[%s314_s26 + $0x14] sm:$0xf0]  ;;  %v1985_v2 = vld [vmem:[%s314_s26 + $0x14] sm:$0xf]  ;;  %s2407_s7 = scalar_lea.vmem %s2878_s2, %s1962_s23 }
  0x10   : > { %v1847_v3 = vor.u32 %v1986_v1, %v1846_v0  ;;  %v1848_v4 = vld [vmem:[%s314_s26 + $0x18] sm:$0xf0]  ;;  %v1838_v5 = vld [vmem:[%s314_s26] sm:$0xf]  ;;  %v1984_v6 = vld [vmem:[%s314_s26 + $0x4] sm:$0xf0] }
  0x11   : > { %v1851_v7 = vor.u32 %v1985_v2, %v1848_v4  ;;  %v1983_v8 = vld [vmem:[%s314_s26 + $0x4] sm:$0xf]  ;;  %v1840_v9 = vld [vmem:[%s314_s26 + $0x8] sm:$0xf0]  ;;  %v1839_v10 = vor.u32 %v1984_v6, %v1838_v5  ;;  %v1969_v14 = vld [vmem:[%s2305_s29 + $0x10] sm:$0xff]  ;;  %s1965_s12 = sshll.u32 %s2887_s18, 6 }
  0x12   : > { %564 = vmatpush.bf16.msra.mxu0 %v1847_v3  ;;  %v1843_v11 = vor.u32 %v1983_v8, %v1840_v9  ;;  %v1967_v12 = vld [vmem:[%s2305_s29] sm:$0xff]  ;;  %v1968_v13 = vld [vmem:[%s2305_s29 + $0x8] sm:$0xff]  ;;  %v1970_v15 = vld [vmem:[%s2305_s29 + $0x18] sm:$0xff]  ;;  %s2844_s15 = scalar_lea.vmem %s2879_s3, %s1965_s12  ;;  %s2850_s22 = scalar_lea.vmem %s2881_s5, %s1965_s12 }
  0x13   : > { %653 = vmatpush.bf16.msra.mxu1 %v1851_v7  ;;  %v1971_v16 = vld [vmem:[%s2305_s29 + $0x20] sm:$0xff]  ;;  %v1972_v17 = vld [vmem:[%s2305_s29 + $0x28] sm:$0xff]  ;;  %v1973_v18 = vld [vmem:[%s2305_s29 + $0x30] sm:$0xff] }
  0x14   : > { %v1974_v19 = vld [vmem:[%s2305_s29 + $0x38] sm:$0xff]  ;;  %v1975_v20 = vld [vmem:[%s2305_s29 + $0x40] sm:$0xff]  ;;  %v1976_v27 = vld [vmem:[%s2305_s29 + $0x48] sm:$0xff] }
  0x15   : > { %v1977_v34 = vld [vmem:[%s2305_s29 + $0x50] sm:$0xff]  ;;  %v1978_v41 = vld [vmem:[%s2305_s29 + $0x58] sm:$0xff]  ;;  %v1979_v48 = vld [vmem:[%s2305_s29 + $0x60] sm:$0xff] }
  0x16   : > { %565 = vmatpush.bf16.msra.mxu0 %v1839_v10  ;;  %v1994_v55 = vld [vmem:[%s2407_s7 + $0x38] sm:$0xff]  ;;  %v1980_v57 = vld [vmem:[%s2305_s29 + $0x68] sm:$0xff]  ;;  %v1993_v59 = vld [vmem:[%s2407_s7 + $0x30] sm:$0xff] }
  0x17   : > { %654 = vmatpush.bf16.msra.mxu1 %v1843_v11  ;;  %v2002_v56 = vld [vmem:[%s2407_s7 + $0x78] sm:$0xff]  ;;  %1280 = vmatpush.bf16.msra.mxu2 %v1994_v55  ;;  %v2001_v60 = vld [vmem:[%s2407_s7 + $0x70] sm:$0xff]  ;;  %v1992_v63 = vld [vmem:[%s2407_s7 + $0x28] sm:$0xff] }
  0x18   : > { %1369 = vmatpush.bf16.msra.mxu3 %v2002_v56  ;;  %v2000_v0 = vld [vmem:[%s2407_s7 + $0x68] sm:$0xff]  ;;  %v1991_v3 = vld [vmem:[%s2407_s7 + $0x20] sm:$0xff]  ;;  %v1990_v6 = vld [vmem:[%s2407_s7 + $0x18] sm:$0xff] }
  0x19   : > { %1852 = vmatmul.msk.bf16.vlgmr.msra.gmra.mxu0 %vm509_vm0, %v1967_v12  ;;  %v1999_v4 = vld [vmem:[%s2407_s7 + $0x60] sm:$0xff]  ;;  %v1998_v7 = vld [vmem:[%s2407_s7 + $0x58] sm:$0xff]  ;;  %v1981_v8 = vld [vmem:[%s2305_s29 + $0x70] sm:$0xff] }
  0x1a   : > { %1868 = vmatmul.msk.bf16.vlgmr.msra.gmra.mxu1 %vm509_vm0, %v1967_v12  ;;  %v1989_v11 = vld [vmem:[%s2407_s7 + $0x10] sm:$0xff] }
  0x1b   : > { %1281 = vmatpush.bf16.msra.mxu2 %v1993_v59  ;;  %v1997_v12 = vld [vmem:[%s2407_s7 + $0x50] sm:$0xff] }
  0x1c   : > { %1370 = vmatpush.bf16.msra.mxu3 %v2001_v60 }
  0x1f   : > { %1282 = vmatpush.bf16.msra.mxu2 %v1992_v63 }
  0x20   : > { %1371 = vmatpush.bf16.msra.mxu3 %v2000_v0 }
  0x23   : > { %1283 = vmatpush.bf16.msra.mxu2 %v1991_v3 }
  0x24   : > { %1372 = vmatpush.bf16.msra.mxu3 %v1999_v4 }
  0x27   : > { %1284 = vmatpush.bf16.msra.mxu2 %v1990_v6 }
  0x28   : > { %1373 = vmatpush.bf16.msra.mxu3 %v1998_v7 }
  0x29   : > { %1853 = vmatmul.msk.bf16.gmra.mxu0 %vm509_vm0, %v1968_v13 }
  0x2a   : > { %1869 = vmatmul.msk.bf16.gmra.mxu1 %vm509_vm0, %v1968_v13 }
  0x2b   : > { %1285 = vmatpush.bf16.msra.mxu2 %v1989_v11 }
  0x2c   : > { %1374 = vmatpush.bf16.msra.mxu3 %v1997_v12 }
  0x39   : > { %1854 = vmatmul.msk.bf16.gmra.mxu0 %vm509_vm0, %v1969_v14 }
  0x3a   : > { %1870 = vmatmul.msk.bf16.gmra.mxu1 %vm509_vm0, %v1969_v14  ;;  %v1988_v14 = vld [vmem:[%s2407_s7 + $0x8] sm:$0xff] }
  0x3b   : > { %1286 = vmatpush.bf16.msra.mxu2 %v1988_v14 }
  0x49   : > { %1855 = vmatmul.msk.bf16.gmra.mxu0 %vm509_vm0, %v1970_v15 }
  0x4a   : > { %1871 = vmatmul.msk.bf16.gmra.mxu1 %vm509_vm0, %v1970_v15  ;;  %v1996_v15 = vld [vmem:[%s2407_s7 + $0x48] sm:$0xff] }
  0x4b   : > { %1375 = vmatpush.bf16.msra.mxu3 %v1996_v15 }
  0x59   : > { %1856 = vmatmul.msk.bf16.gmra.mxu0 %vm509_vm0, %v1971_v16 }
  0x5a   : > { %1872 = vmatmul.msk.bf16.gmra.mxu1 %vm509_vm0, %v1971_v16 }
  0x69   : > { %1857 = vmatmul.msk.bf16.gmra.mxu0 %vm509_vm0, %v1972_v17 }
  0x6a   : > { %1873 = vmatmul.msk.bf16.gmra.mxu1 %vm509_vm0, %v1972_v17 }
  0x79   : > { %1858 = vmatmul.msk.bf16.gmra.mxu0 %vm509_vm0, %v1973_v18 }
  0x7a   : > { %1874 = vmatmul.msk.bf16.gmra.mxu1 %vm509_vm0, %v1973_v18  ;;  %v1987_v18 = vld [vmem:[%s2407_s7] sm:$0xff] }
  0x7b   : > { %1287 = vmatpush.bf16.msra.mxu2 %v1987_v18 }
  0x89   : > { %1859 = vmatmul.msk.bf16.gmra.mxu0 %vm509_vm0, %v1974_v19 }
  0x8a   : > { %1875 = vmatmul.msk.bf16.gmra.mxu1 %vm509_vm0, %v1974_v19  ;;  %v1995_v19 = vld [vmem:[%s2407_s7 + $0x40] sm:$0xff] }
  0x8b   : > { %1376 = vmatpush.bf16.msra.mxu3 %v1995_v19 }
  0x96   : > { %v2332_v21 = vpop.f32.mrf.mxu0 }
  0x97   : > { %v2334_v22 = vpop.f32.mrf.mxu1 }
  0x98   : > { %v736_v23 = vmax.f32 %v2332_v21, %v2334_v22 }
  0x99   : > { %1860 = vmatmul.msk.bf16.gmra.mxu0 %vm509_vm0, %v1975_v20 }
  0x9a   : > { %1876 = vmatmul.msk.bf16.gmra.mxu1 %vm509_vm0, %v1975_v20  ;;  %737 = vmax.xlane.f32.xlu0 %v736_v23  ;;  %v1982_v23 = vld [vmem:[%s2305_s29 + $0x78] sm:$0xff] }
  0x9e   : > { %v2340_v24 = vpop.f32.mrf.mxu0 }
  0x9f   : > { %v2342_v25 = vpop.f32.mrf.mxu1 }
  0xa0   : > { %v739_v26 = vmax.f32 %v2340_v24, %v2342_v25 }
  0xa2   : > { %740 = vmax.xlane.f32.xlu0 %v739_v26 }
  0xa6   : > { %v2347_v28 = vpop.f32.mrf.mxu0 }
  0xa7   : > { %v2349_v29 = vpop.f32.mrf.mxu1 }
  0xa8   : > { %v742_v30 = vmax.f32 %v2347_v28, %v2349_v29 }
  0xa9   : > { %1861 = vmatmul.msk.bf16.gmra.mxu0 %vm509_vm0, %v1976_v27 }
  0xaa   : > { %1877 = vmatmul.msk.bf16.gmra.mxu1 %vm509_vm0, %v1976_v27  ;;  %743 = vmax.xlane.f32.xlu1 %v742_v30 }
  0xae   : > { %v2355_v31 = vpop.f32.mrf.mxu0 }
  0xaf   : > { %v2357_v32 = vpop.f32.mrf.mxu1 }
  0xb0   : > { %v745_v33 = vmax.f32 %v2355_v31, %v2357_v32 }
  0xb2   : > { %746 = vmax.xlane.f32.xlu1 %v745_v33 }
  0xb6   : > { %v2362_v35 = vpop.f32.mrf.mxu0 }
  0xb7   : > { %v2364_v36 = vpop.f32.mrf.mxu1 }
  0xb8   : > { %v748_v37 = vmax.f32 %v2362_v35, %v2364_v36 }
  0xb9   : > { %1862 = vmatmul.msk.bf16.gmra.mxu0 %vm509_vm0, %v1977_v34 }
  0xba   : > { %1878 = vmatmul.msk.bf16.gmra.mxu1 %vm509_vm0, %v1977_v34  ;;  %749 = vmax.xlane.f32.xlu2 %v748_v37 }
  0xbe   : > { %v2370_v38 = vpop.f32.mrf.mxu0 }
  0xbf   : > { %v2372_v39 = vpop.f32.mrf.mxu1 }
  0xc0   : > { %v751_v40 = vmax.f32 %v2370_v38, %v2372_v39 }
  0xc2   : > { %752 = vmax.xlane.f32.xlu2 %v751_v40 }
  0xc6   : > { %v2377_v42 = vpop.f32.mrf.mxu0 }
  0xc7   : > { %v2379_v43 = vpop.f32.mrf.mxu1 }
  0xc8   : > { %v754_v44 = vmax.f32 %v2377_v42, %v2379_v43 }
  0xc9   : > { %1863 = vmatmul.msk.bf16.gmra.mxu0 %vm509_vm0, %v1978_v41 }
  0xca   : > { %1879 = vmatmul.msk.bf16.gmra.mxu1 %vm509_vm0, %v1978_v41  ;;  %755 = vmax.xlane.f32.xlu0 %v754_v44 }
  0xce   : > { %v2385_v45 = vpop.f32.mrf.mxu0 }
  0xcf   : > { %v2387_v46 = vpop.f32.mrf.mxu1 }
  0xd0   : > { %v757_v47 = vmax.f32 %v2385_v45, %v2387_v46 }
  0xd2   : > { %758 = vmax.xlane.f32.xlu1 %v757_v47 }
  0xd6   : > { %v2392_v49 = vpop.f32.mrf.mxu0 }
  0xd7   : > { %v2394_v50 = vpop.f32.mrf.mxu1 }
  0xd8   : > { %v760_v51 = vmax.f32 %v2392_v49, %v2394_v50 }
  0xd9   : > { %1864 = vmatmul.msk.bf16.gmra.mxu0 %vm509_vm0, %v1979_v48 }
  0xda   : > { %1880 = vmatmul.msk.bf16.gmra.mxu1 %vm509_vm0, %v1979_v48  ;;  %761 = vmax.xlane.f32.xlu2 %v760_v51 }
  0xde   : > { %v2400_v52 = vpop.f32.mrf.mxu0 }
  0xdf   : > { %v2409_v53 = vpop.f32.mrf.mxu1 }
  0xe0   : > { %v763_v54 = vmax.f32 %v2400_v52, %v2409_v53 }
  0xe2   : > { %764 = vmax.xlane.f32.xlu0 %v763_v54 }
  0xe6   : > { %v2416_v58 = vpop.f32.mrf.mxu0 }
  0xe7   : > { %v2420_v61 = vpop.f32.mrf.mxu1 }
  0xe8   : > { %v766_v62 = vmax.f32 %v2416_v58, %v2420_v61 }
  0xe9   : > { %1865 = vmatmul.msk.bf16.gmra.mxu0 %vm509_vm0, %v1980_v57 }
  0xea   : > { %1881 = vmatmul.msk.bf16.gmra.mxu1 %vm509_vm0, %v1980_v57  ;;  %767 = vmax.xlane.f32.xlu1 %v766_v62 }
  0xee   : > { %v2428_v1 = vpop.f32.mrf.mxu0 }
  0xef   : > { %v2430_v2 = vpop.f32.mrf.mxu1 }
  0xf0   : > { %v769_v5 = vmax.f32 %v2428_v1, %v2430_v2 }
  0xf2   : > { %770 = vmax.xlane.f32.xlu2 %v769_v5 }
  0xf6   : > { %v2439_v9 = vpop.f32.mrf.mxu0 }
  0xf7   : > { %v2441_v10 = vpop.f32.mrf.mxu1 }
  0xf8   : > { %v772_v13 = vmax.f32 %v2439_v9, %v2441_v10 }
  0xf9   : > { %1866 = vmatmul.msk.bf16.gmra.mxu0 %vm509_vm0, %v1981_v8 }
  0xfa   : > { %1882 = vmatmul.msk.bf16.gmra.mxu1 %vm509_vm0, %v1981_v8  ;;  %773 = vmax.xlane.f32.xlu0 %v772_v13 }
  0xfe   : > { %v2451_v16 = vpop.f32.mrf.mxu0 }
  0xff   : > { %v2453_v17 = vpop.f32.mrf.mxu1 }
 0x100   : > { %v775_v20 = vmax.f32 %v2451_v16, %v2453_v17 }
 0x102   : > { %776 = vmax.xlane.f32.xlu1 %v775_v20 }
 0x106   : > { %v2460_v26 = vpop.f32.mrf.mxu0 }
 0x107   : > { %v2462_v27 = vpop.f32.mrf.mxu1 }
 0x108   : > { %v778_v30 = vmax.f32 %v2460_v26, %v2462_v27 }
 0x109   : > { %1867 = vmatmul.msk.bf16.gmra.mxu0 %vm509_vm0, %v1982_v23 }
 0x10a   : > { %1883 = vmatmul.msk.bf16.gmra.mxu1 %vm509_vm0, %v1982_v23  ;;  %779 = vmax.xlane.f32.xlu2 %v778_v30 }
 0x10d   : > { %v738_v33 = vpop.xlane.xlu0 %737 }
 0x10e   : > { %v832_v34 = vsub.f32 %v2332_v21, %v738_v33  ;;  %v833_v37 = vsub.f32 %v2334_v22, %v738_v33  ;;  %v2470_v40 = vpop.f32.mrf.mxu0 }
 0x10f   : > { %v2472_v41 = vpop.f32.mrf.mxu1 }
 0x110   : > { %v896_v44 = vmul.f32 1.442695, %v832_v34  ;;  %v898_v47 = vmul.f32 1.442695, %v833_v37  ;;  %v781_v48 = vmax.f32 %v2470_v40, %v2472_v41 }
 0x112   : > { %2029 = vpow2.f32 %v896_v44  ;;  %782 = vmax.xlane.f32.xlu0 %v781_v48 }
 0x113   : > { %2031 = vpow2.f32 %v898_v47 }
 0x115   : > { %v741_v51 = vpop.xlane.xlu0 %740 }
 0x116   : > { %v834_v54 = vsub.f32 %v2340_v24, %v741_v51  ;;  %v835_v55 = vsub.f32 %v2342_v25, %v741_v51  ;;  %v2478_v21 = vpop.f32.mrf.mxu0 }
 0x117   : > { %v2480_v22 = vpop.f32.mrf.mxu1 }
 0x118   : > { %v2030_v56 = vpop.eup %2029  ;;  %v900_v57 = vmul.f32 1.442695, %v834_v54  ;;  %v902_v59 = vmul.f32 1.442695, %v835_v55  ;;  %v784_v60 = vmax.f32 %v2478_v21, %v2480_v22 }
 0x119   : > { %v2032_v62 = vpop.eup %2031 }
 0x11a   : > { %2033 = vpow2.f32 %v900_v57  ;;  %785 = vmax.xlane.f32.xlu1 %v784_v60  ;;  %v2484_v63 = vadd.f32 %v2032_v62, %v2030_v56 }
 0x11b   : > { %2035 = vpow2.f32 %v902_v59 }
 0x11d   : > { %v744_v0 = vpop.xlane.xlu1 %743 }
 0x11e   : > { %v836_v24 = vsub.f32 %v2347_v28, %v744_v0  ;;  %v837_v25 = vsub.f32 %v2349_v29, %v744_v0  ;;  %v2488_v3 = vpop.f32.mrf.mxu0 }
 0x11f   : > { %v2490_v4 = vpop.f32.mrf.mxu1 }
 0x120   : > { %v2034_v5 = vpop.eup %2033  ;;  %v904_v6 = vmul.f32 1.442695, %v836_v24  ;;  %v906_v7 = vmul.f32 1.442695, %v837_v25  ;;  %v787_v8 = vmax.f32 %v2488_v3, %v2490_v4 }
 0x121   : > { %v2036_v11 = vpop.eup %2035  ;;  %v1152_v12 = vpack.c.bf16 %v2034_v5, %v2030_v56 }
 0x122   : > { %2037 = vpow2.f32 %v904_v6  ;;  %788 = vmax.xlane.f32.xlu2 %v787_v8  ;;  %v1153_v13 = vpack.c.bf16 %v2036_v11, %v2032_v62  ;;  %v2494_v14 = vadd.f32 %v2036_v11, %v2034_v5 }
 0x123   : > { %2039 = vpow2.f32 %v906_v7  ;;  %1288 = vmatmul.bf16.vlgmr.msra.gmra.mxu2 %v1152_v12 }
 0x124   : > { %1377 = vmatmul.bf16.vlgmr.msra.gmra.mxu3 %v1153_v13 }
 0x125   : > { %v747_v28 = vpop.xlane.xlu1 %746 }
 0x126   : > { %v838_v29 = vsub.f32 %v2355_v31, %v747_v28  ;;  %v839_v15 = vsub.f32 %v2357_v32, %v747_v28  ;;  %v2498_v18 = vpop.f32.mrf.mxu0 }
 0x127   : > { %v2500_v19 = vpop.f32.mrf.mxu1 }
 0x128   : > { %v2038_v20 = vpop.eup %2037  ;;  %v908_v23 = vmul.f32 1.442695, %v838_v29  ;;  %v910_v30 = vmul.f32 1.442695, %v839_v15  ;;  %v790_v33 = vmax.f32 %v2498_v18, %v2500_v19 }
 0x129   : > { %v2040_v34 = vpop.eup %2039 }
 0x12a   : > { %2041 = vpow2.f32 %v908_v23  ;;  %791 = vmax.xlane.f32.xlu0 %v790_v33  ;;  %v2504_v37 = vadd.f32 %v2040_v34, %v2038_v20 }
 0x12b   : > { %2043 = vpow2.f32 %v910_v30 }
 0x12d   : > { %v750_v44 = vpop.xlane.xlu2 %749 }
 0x12e   : > { %v840_v31 = vsub.f32 %v2362_v35, %v750_v44  ;;  %v841_v32 = vsub.f32 %v2364_v36, %v750_v44  ;;  %v2508_v47 = vpop.f32.mrf.mxu0 }
 0x12f   : > { %v2510_v48 = vpop.f32.mrf.mxu1 }
 0x130   : > { %v2042_v51 = vpop.eup %2041  ;;  %v912_v54 = vmul.f32 1.442695, %v840_v31  ;;  %v914_v55 = vmul.f32 1.442695, %v841_v32  ;;  %v793_v56 = vmax.f32 %v2508_v47, %v2510_v48 }
 0x131   : > { %v2044_v57 = vpop.eup %2043  ;;  %v1154_v59 = vpack.c.bf16 %v2042_v51, %v2038_v20 }
 0x132   : > { %2045 = vpow2.f32 %v912_v54  ;;  %794 = vmax.xlane.f32.xlu1 %v793_v56  ;;  %v1155_v60 = vpack.c.bf16 %v2044_v57, %v2040_v34  ;;  %v2514_v62 = vadd.f32 %v2044_v57, %v2042_v51 }
 0x133   : > { %2047 = vpow2.f32 %v914_v55  ;;  %1293 = vmatmul.bf16.gmra.mxu2 %v1154_v59 }
 0x134   : > { %1382 = vmatmul.bf16.gmra.mxu3 %v1155_v60 }
 0x135   : > { %v753_v35 = vpop.xlane.xlu2 %752 }
 0x136   : > { %v842_v36 = vsub.f32 %v2370_v38, %v753_v35  ;;  %v843_v0 = vsub.f32 %v2372_v39, %v753_v35  ;;  %v2518_v24 = vpop.f32.mrf.mxu0 }
 0x137   : > { %v2520_v25 = vpop.f32.mrf.mxu1 }
 0x138   : > { %v2046_v5 = vpop.eup %2045  ;;  %v916_v6 = vmul.f32 1.442695, %v842_v36  ;;  %v918_v7 = vmul.f32 1.442695, %v843_v0  ;;  %v796_v8 = vmax.f32 %v2518_v24, %v2520_v25 }
 0x139   : > { %v2048_v11 = vpop.eup %2047 }
 0x13a   : > { %2049 = vpow2.f32 %v916_v6  ;;  %797 = vmax.xlane.f32.xlu2 %v796_v8  ;;  %v2524_v12 = vadd.f32 %v2048_v11, %v2046_v5 }
 0x13b   : > { %2051 = vpow2.f32 %v918_v7 }
 0x13d   : > { %v756_v13 = vpop.xlane.xlu0 %755 }
 0x13e   : > { %v844_v38 = vsub.f32 %v2377_v42, %v756_v13  ;;  %v845_v39 = vsub.f32 %v2379_v43, %v756_v13  ;;  %v2528_v28 = vpop.f32.mrf.mxu0 }
 0x13f   : > { %v2530_v29 = vpop.f32.mrf.mxu1 }
 0x140   : > { %v2050_v15 = vpop.eup %2049  ;;  %v920_v20 = vmul.f32 1.442695, %v844_v38  ;;  %v922_v23 = vmul.f32 1.442695, %v845_v39  ;;  %v799_v30 = vmax.f32 %v2528_v28, %v2530_v29 }
 0x141   : > { %v2052_v33 = vpop.eup %2051  ;;  %v1156_v34 = vpack.c.bf16 %v2050_v15, %v2046_v5 }
 0x142   : > { %2053 = vpow2.f32 %v920_v20  ;;  %800 = vmax.xlane.f32.xlu0 %v799_v30  ;;  %v1157_v44 = vpack.c.bf16 %v2052_v33, %v2048_v11  ;;  %v2534_v31 = vadd.f32 %v2052_v33, %v2050_v15 }
 0x143   : > { %2055 = vpow2.f32 %v922_v23  ;;  %1298 = vmatmul.bf16.gmra.mxu2 %v1156_v34 }
 0x144   : > { %1387 = vmatmul.bf16.gmra.mxu3 %v1157_v44 }
 0x145   : > { %v759_v42 = vpop.xlane.xlu1 %758 }
 0x146   : > { %v846_v43 = vsub.f32 %v2385_v45, %v759_v42  ;;  %v847_v32 = vsub.f32 %v2387_v46, %v759_v42  ;;  %v2538_v51 = vpop.f32.mrf.mxu0 }
 0x147   : > { %v2540_v54 = vpop.f32.mrf.mxu1 }
 0x148   : > { %v2054_v55 = vpop.eup %2053  ;;  %v924_v56 = vmul.f32 1.442695, %v846_v43  ;;  %v926_v57 = vmul.f32 1.442695, %v847_v32  ;;  %v802_v59 = vmax.f32 %v2538_v51, %v2540_v54 }
 0x149   : > { %v2056_v60 = vpop.eup %2055 }
 0x14a   : > { %2057 = vpow2.f32 %v924_v56  ;;  %803 = vmax.xlane.f32.xlu1 %v802_v59  ;;  %v2544_v35 = vadd.f32 %v2056_v60, %v2054_v55 }
 0x14b   : > { %2059 = vpow2.f32 %v926_v57 }
 0x14d   : > { %v762_v36 = vpop.xlane.xlu2 %761 }
 0x14e   : > { %v848_v45 = vsub.f32 %v2392_v49, %v762_v36  ;;  %v849_v46 = vsub.f32 %v2394_v50, %v762_v36  ;;  %v2548_v0 = vpop.f32.mrf.mxu0 }
 0x14f   : > { %v2550_v5 = vpop.f32.mrf.mxu1 }
 0x150   : > { %v2058_v6 = vpop.eup %2057  ;;  %v928_v7 = vmul.f32 1.442695, %v848_v45  ;;  %v930_v8 = vmul.f32 1.442695, %v849_v46  ;;  %v805_v11 = vmax.f32 %v2548_v0, %v2550_v5 }
 0x151   : > { %v2060_v13 = vpop.eup %2059  ;;  %v1158_v38 = vpack.c.bf16 %v2058_v6, %v2054_v55 }
 0x152   : > { %2061 = vpow2.f32 %v928_v7  ;;  %806 = vmax.xlane.f32.xlu2 %v805_v11  ;;  %v1159_v39 = vpack.c.bf16 %v2060_v13, %v2056_v60  ;;  %v2554_v15 = vadd.f32 %v2060_v13, %v2058_v6 }
 0x153   : > { %2063 = vpow2.f32 %v930_v8  ;;  %1303 = vmatmul.bf16.gmra.mxu2 %v1158_v38 }
 0x154   : > { %1392 = vmatmul.bf16.gmra.mxu3 %v1159_v39 }
 0x155   : > { %v765_v49 = vpop.xlane.xlu0 %764 }
 0x156   : > { %v850_v50 = vsub.f32 %v2400_v52, %v765_v49  ;;  %v851_v20 = vsub.f32 %v2409_v53, %v765_v49  ;;  %v2558_v23 = vpop.f32.mrf.mxu0 }
 0x157   : > { %v2560_v30 = vpop.f32.mrf.mxu1 }
 0x158   : > { %v2062_v33 = vpop.eup %2061  ;;  %v932_v34 = vmul.f32 1.442695, %v850_v50  ;;  %v934_v44 = vmul.f32 1.442695, %v851_v20  ;;  %v808_v42 = vmax.f32 %v2558_v23, %v2560_v30 }
 0x159   : > { %v2064_v43 = vpop.eup %2063 }
 0x15a   : > { %2065 = vpow2.f32 %v932_v34  ;;  %809 = vmax.xlane.f32.xlu0 %v808_v42  ;;  %v2564_v32 = vadd.f32 %v2064_v43, %v2062_v33 }
 0x15b   : > { %2067 = vpow2.f32 %v934_v44 }
 0x15d   : > { %v768_v55 = vpop.xlane.xlu1 %767 }
 0x15e   : > { %v2566_v52 = vpop.f32.mrf.mxu0  ;;  %v852_v57 = vsub.f32 %v2416_v58, %v768_v55  ;;  %v853_v36 = vsub.f32 %v2420_v61, %v768_v55 }
 0x15f   : > { %v2568_v53 = vpop.f32.mrf.mxu1 }
 0x160   : > { %v2066_v56 = vpop.eup %2065  ;;  %v811_v59 = vmax.f32 %v2566_v52, %v2568_v53  ;;  %v936_v7 = vmul.f32 1.442695, %v852_v57  ;;  %v938_v8 = vmul.f32 1.442695, %v853_v36 }
 0x161   : > { %v2068_v60 = vpop.eup %2067  ;;  %v1160_v45 = vpack.c.bf16 %v2066_v56, %v2062_v33 }
 0x162   : > { %812 = vmax.xlane.f32.xlu1 %v811_v59  ;;  %v1161_v46 = vpack.c.bf16 %v2068_v60, %v2064_v43  ;;  %v2574_v6 = vadd.f32 %v2068_v60, %v2066_v56  ;;  %2069 = vpow2.f32 %v936_v7 }
 0x163   : > { %1308 = vmatmul.bf16.gmra.mxu2 %v1160_v45  ;;  %2071 = vpow2.f32 %v938_v8 }
 0x164   : > { %1397 = vmatmul.bf16.gmra.mxu3 %v1161_v46 }
 0x165   : > { %v771_v11 = vpop.xlane.xlu2 %770 }
 0x166   : > { %v854_v13 = vsub.f32 %v2428_v1, %v771_v11  ;;  %v855_v58 = vsub.f32 %v2430_v2, %v771_v11  ;;  %v2578_v38 = vpop.f32.mrf.mxu0 }
 0x167   : > { %v2580_v39 = vpop.f32.mrf.mxu1 }
 0x168   : > { %v940_v61 = vmul.f32 1.442695, %v854_v13  ;;  %v942_v49 = vmul.f32 1.442695, %v855_v58  ;;  %v814_v50 = vmax.f32 %v2578_v38, %v2580_v39  ;;  %v2584_v33 = vpop.eup %2069 }
 0x169   : > { %v2588_v2 = vpop.eup %2071 }
 0x16a   : > { %2073 = vpow2.f32 %v940_v61  ;;  %815 = vmax.xlane.f32.xlu2 %v814_v50 }
 0x16b   : > { %2075 = vpow2.f32 %v942_v49 }
 0x16d   : > { %v774_v20 = vpop.xlane.xlu0 %773 }
 0x16e   : > { %v2586_v1 = vpop.f32.mrf.mxu0  ;;  %v856_v42 = vsub.f32 %v2439_v9, %v774_v20  ;;  %v857_v56 = vsub.f32 %v2441_v10, %v774_v20 }
 0x16f   : > { %v2590_v34 = vpop.f32.mrf.mxu1 }
 0x170   : > { %v2592_v44 = vpop.eup %2073  ;;  %v817_v43 = vmax.f32 %v2586_v1, %v2590_v34  ;;  %v944_v60 = vmul.f32 1.442695, %v856_v42  ;;  %v946_v36 = vmul.f32 1.442695, %v857_v56 }
 0x171   : > { %v2597_v55 = vpop.eup %2075  ;;  %v1162_v57 = vpack.c.bf16 %v2592_v44, %v2584_v33 }
 0x172   : > { %818 = vmax.xlane.f32.xlu0 %v817_v43  ;;  %v1163_v59 = vpack.c.bf16 %v2597_v55, %v2588_v2  ;;  %2077 = vpow2.f32 %v944_v60 }
 0x173   : > { %1313 = vmatmul.bf16.gmra.mxu2 %v1162_v57  ;;  %2079 = vpow2.f32 %v946_v36 }
 0x174   : > { %1402 = vmatmul.bf16.gmra.mxu3 %v1163_v59 }
 0x175   : > { %v777_v45 = vpop.xlane.xlu1 %776 }
 0x176   : > { %v858_v9 = vsub.f32 %v2451_v16, %v777_v45  ;;  %v859_v46 = vsub.f32 %v2453_v17, %v777_v45  ;;  %v2606_v7 = vpop.f32.mrf.mxu0 }
 0x177   : > { %v2608_v8 = vpop.f32.mrf.mxu1 }
 0x178   : > { %v948_v10 = vmul.f32 1.442695, %v858_v9  ;;  %v950_v11 = vmul.f32 1.442695, %v859_v46  ;;  %v820_v13 = vmax.f32 %v2606_v7, %v2608_v8  ;;  %v2078_v61 = vpop.eup %2077 }
 0x179   : > { %v2080_v50 = vpop.eup %2079 }
 0x17a   : > { %2081 = vpow2.f32 %v948_v10  ;;  %821 = vmax.xlane.f32.xlu1 %v820_v13 }
 0x17b   : > { %2083 = vpow2.f32 %v950_v11 }
 0x17d   : > { %v780_v58 = vpop.xlane.xlu2 %779 }
 0x17e   : > { %v860_v16 = vsub.f32 %v2460_v26, %v780_v58  ;;  %v861_v17 = vsub.f32 %v2462_v27, %v780_v58  ;;  %v2614_v49 = vpop.f32.mrf.mxu0 }
 0x17f   : > { %v2616_v20 = vpop.f32.mrf.mxu1 }
 0x180   : > { %v2082_v42 = vpop.eup %2081  ;;  %v952_v43 = vmul.f32 1.442695, %v860_v16  ;;  %v954_v56 = vmul.f32 1.442695, %v861_v17  ;;  %v823_v57 = vmax.f32 %v2614_v49, %v2616_v20 }
 0x181   : > { %v2084_v59 = vpop.eup %2083  ;;  %v1164_v60 = vpack.c.bf16 %v2082_v42, %v2078_v61 }
 0x182   : > { %2085 = vpow2.f32 %v952_v43  ;;  %824 = vmax.xlane.f32.xlu2 %v823_v57  ;;  %v1165_v36 = vpack.c.bf16 %v2084_v59, %v2080_v50 }
 0x183   : > { %2087 = vpow2.f32 %v954_v56  ;;  %1318 = vmatmul.bf16.gmra.mxu2 %v1164_v60 }
 0x184   : > { %1407 = vmatmul.bf16.gmra.mxu3 %v1165_v36 }
 0x185   : > { %v783_v26 = vpop.xlane.xlu0 %782 }
 0x186   : > { %v862_v27 = vsub.f32 %v2470_v40, %v783_v26  ;;  %v863_v45 = vsub.f32 %v2472_v41, %v783_v26  ;;  %v2622_v9 = vpop.f32.mrf.mxu0 }
 0x187   : > { %v2624_v46 = vpop.f32.mrf.mxu1 }
 0x188   : > { %v2086_v10 = vpop.eup %2085  ;;  %v956_v11 = vmul.f32 1.442695, %v862_v27  ;;  %v958_v13 = vmul.f32 1.442695, %v863_v45  ;;  %v826_v58 = vmax.f32 %v2622_v9, %v2624_v46  ;;  %v1060_v27 = vadd.f32 %v2080_v50, %v2078_v61 }
 0x189   : > { %v2088_v16 = vpop.eup %2087 }
 0x18a   : > { %2089 = vpow2.f32 %v956_v11  ;;  %827 = vmax.xlane.f32.xlu0 %v826_v58  ;;  %v1066_v17 = vadd.f32 %v2088_v16, %v2086_v10 }
 0x18b   : > { %2091 = vpow2.f32 %v958_v13 }
 0x18c   : > { %1067 = vadd.xlane.f32.xlu2 %v1066_v17 }
 0x18d   : > { %v786_v43 = vpop.xlane.xlu1 %785 }
 0x18e   : > { %v864_v40 = vsub.f32 %v2478_v21, %v786_v43  ;;  %v865_v41 = vsub.f32 %v2480_v22, %v786_v43  ;;  %v2630_v56 = vpop.f32.mrf.mxu0  ;;  %v1057_v21 = vadd.f32 %v2597_v55, %v2592_v44 }
 0x18f   : > { %v2632_v57 = vpop.f32.mrf.mxu1 }
 0x190   : > { %v2090_v60 = vpop.eup %2089  ;;  %v960_v36 = vmul.f32 1.442695, %v864_v40  ;;  %v962_v26 = vmul.f32 1.442695, %v865_v41  ;;  %v829_v45 = vmax.f32 %v2630_v56, %v2632_v57  ;;  %v1063_v41 = vadd.f32 %v2084_v59, %v2082_v42 }
 0x191   : > { %v2092_v11 = vpop.eup %2091  ;;  %v1166_v58 = vpack.c.bf16 %v2090_v60, %v2086_v10 }
 0x192   : > { %2093 = vpow2.f32 %v960_v36  ;;  %1061 = vadd.xlane.f32.xlu0 %v1060_v27  ;;  %830 = vmax.xlane.f32.xlu1 %v829_v45  ;;  %v1167_v13 = vpack.c.bf16 %v2092_v11, %v2088_v16  ;;  %v1069_v10 = vadd.f32 %v2092_v11, %v2090_v60  ;;  %v1054_v45 = vadd.f32 %v2588_v2, %v2584_v33 }
 0x193   : > { %2095 = vpow2.f32 %v962_v26  ;;  %1323 = vmatmul.bf16.gmra.mxu2 %v1166_v58 }
 0x194   : > { %1412 = vmatmul.bf16.gmra.mxu3 %v1167_v13  ;;  %1058 = vadd.xlane.f32.xlu2 %v1057_v21 }
 0x195   : > { %v789_v22 = vpop.xlane.xlu2 %788 }
 0x196   : > { %v866_v17 = vsub.f32 %v2488_v3, %v789_v22  ;;  %v867_v61 = vsub.f32 %v2490_v4, %v789_v22 }
 0x198   : > { %v2094_v50 = vpop.eup %2093  ;;  %v964_v43 = vmul.f32 1.442695, %v866_v17  ;;  %v966_v40 = vmul.f32 1.442695, %v867_v61 }
 0x199   : > { %v2096_v36 = vpop.eup %2095 }
 0x19a   : > { %2097 = vpow2.f32 %v964_v43  ;;  %1070 = vadd.xlane.f32.xlu0 %v1069_v10  ;;  %1064 = vadd.xlane.f32.xlu1 %v1063_v41  ;;  %v2640_v16 = vadd.f32 %v2096_v36, %v2094_v50 }
 0x19b   : > { %2099 = vpow2.f32 %v966_v40 }
 0x19d   : > { %v792_v44 = vpop.xlane.xlu0 %791 }
 0x19e   : > { %v868_v55 = vsub.f32 %v2498_v18, %v792_v44  ;;  %v869_v26 = vsub.f32 %v2500_v19, %v792_v44 }
 0x1a0   : > { %v2098_v3 = vpop.eup %2097  ;;  %v968_v27 = vmul.f32 1.442695, %v868_v55  ;;  %v970_v4 = vmul.f32 1.442695, %v869_v26 }
 0x1a1   : > { %v2100_v60 = vpop.eup %2099  ;;  %v1168_v42 = vpack.c.bf16 %v2098_v3, %v2094_v50 }
 0x1a2   : > { %2101 = vpow2.f32 %v968_v27  ;;  %1055 = vadd.xlane.f32.xlu1 %v1054_v45  ;;  %v1169_v59 = vpack.c.bf16 %v2100_v60, %v2096_v36  ;;  %v2646_v11 = vadd.f32 %v2100_v60, %v2098_v3 }
 0x1a3   : > { %2103 = vpow2.f32 %v970_v4  ;;  %1328 = vmatmul.bf16.gmra.mxu2 %v1168_v42 }
 0x1a4   : > { %1417 = vmatmul.bf16.gmra.mxu3 %v1169_v59 }
 0x1a5   : > { %v795_v58 = vpop.xlane.xlu1 %794 }
 0x1a6   : > { %v870_v18 = vsub.f32 %v2508_v47, %v795_v58  ;;  %v871_v19 = vsub.f32 %v2510_v48, %v795_v58  ;;  %v1289_v13 = vpop.f32.mrf.mxu2 }
 0x1a7   : > { %v1378_v21 = vpop.f32.mrf.mxu3 }
 0x1a8   : > { %v2102_v22 = vpop.eup %2101  ;;  %v972_v17 = vmul.f32 1.442695, %v870_v18  ;;  %v974_v33 = vmul.f32 1.442695, %v871_v19  ;;  %v2650_v2 = vadd.f32 %v1378_v21, %v1289_v13 }
 0x1a9   : > { %v2104_v61 = vpop.eup %2103 }
 0x1aa   : > { %2105 = vpow2.f32 %v972_v17  ;;  %v2652_v50 = vadd.f32 %v2104_v61, %v2102_v22 }
 0x1ab   : > { %2107 = vpow2.f32 %v974_v33 }
 0x1ad   : > { %v798_v43 = vpop.xlane.xlu2 %797 }
 0x1ae   : > { %v872_v40 = vsub.f32 %v2518_v24, %v798_v43  ;;  %v873_v10 = vsub.f32 %v2520_v25, %v798_v43  ;;  %v1291_v47 = vpop.f32.mrf.mxu2 }
 0x1af   : > { %v1380_v41 = vpop.f32.mrf.mxu3 }
 0x1b0   : > { %v2106_v48 = vpop.eup %2105  ;;  %v976_v36 = vmul.f32 1.442695, %v872_v40  ;;  %v978_v44 = vmul.f32 1.442695, %v873_v10  ;;  %v2656_v55 = vadd.f32 %v1380_v41, %v1291_v47 }
 0x1b1   : > { %v2108_v26 = vpop.eup %2107  ;;  %v1170_v3 = vpack.c.bf16 %v2106_v48, %v2102_v22 }
 0x1b2   : > { %2109 = vpow2.f32 %v976_v36  ;;  %v1171_v27 = vpack.c.bf16 %v2108_v26, %v2104_v61  ;;  %v2658_v4 = vadd.f32 %v2108_v26, %v2106_v48 }
 0x1b3   : > { %2111 = vpow2.f32 %v978_v44  ;;  %1333 = vmatmul.bf16.gmra.mxu2 %v1170_v3 }
 0x1b4   : > { %1422 = vmatmul.bf16.gmra.mxu3 %v1171_v27 }
 0x1b5   : > { %v801_v45 = vpop.xlane.xlu0 %800 }
 0x1b6   : > { %v874_v24 = vsub.f32 %v2528_v28, %v801_v45  ;;  %v875_v25 = vsub.f32 %v2530_v29, %v801_v45  ;;  %v1294_v60 = vpop.f32.mrf.mxu2 }
 0x1b7   : > { %v1383_v42 = vpop.f32.mrf.mxu3 }
 0x1b8   : > { %v2110_v59 = vpop.eup %2109  ;;  %v980_v58 = vmul.f32 1.442695, %v874_v24  ;;  %v982_v18 = vmul.f32 1.442695, %v875_v25  ;;  %v2662_v19 = vadd.f32 %v1383_v42, %v1294_v60 }
 0x1b9   : > { %v2112_v13 = vpop.eup %2111 }
 0x1ba   : > { %2113 = vpow2.f32 %v980_v58  ;;  %v2664_v21 = vadd.f32 %v2112_v13, %v2110_v59 }
 0x1bb   : > { %2115 = vpow2.f32 %v982_v18 }
 0x1bd   : > { %v804_v22 = vpop.xlane.xlu1 %803 }
 0x1be   : > { %v876_v17 = vsub.f32 %v2538_v51, %v804_v22  ;;  %v877_v33 = vsub.f32 %v2540_v54, %v804_v22  ;;  %v1296_v28 = vpop.f32.mrf.mxu2 }
 0x1bf   : > { %v1385_v61 = vpop.f32.mrf.mxu3 }
 0x1c0   : > { %v2114_v29 = vpop.eup %2113  ;;  %v984_v43 = vmul.f32 1.442695, %v876_v17  ;;  %v986_v40 = vmul.f32 1.442695, %v877_v33  ;;  %v2668_v10 = vadd.f32 %v1385_v61, %v1296_v28 }
 0x1c1   : > { %v2116_v47 = vpop.eup %2115  ;;  %v1172_v41 = vpack.c.bf16 %v2114_v29, %v2110_v59 }
 0x1c2   : > { %2117 = vpow2.f32 %v984_v43  ;;  %v1173_v48 = vpack.c.bf16 %v2116_v47, %v2112_v13  ;;  %v2670_v36 = vadd.f32 %v2116_v47, %v2114_v29 }
 0x1c3   : > { %2119 = vpow2.f32 %v986_v40  ;;  %1338 = vmatmul.bf16.gmra.mxu2 %v1172_v41 }
 0x1c4   : > { %1427 = vmatmul.bf16.gmra.mxu3 %v1173_v48 }
 0x1c5   : > { %v807_v44 = vpop.xlane.xlu2 %806 }
 0x1c6   : > { %v878_v51 = vsub.f32 %v2548_v0, %v807_v44  ;;  %v879_v54 = vsub.f32 %v2550_v5, %v807_v44  ;;  %v1299_v26 = vpop.f32.mrf.mxu2 }
 0x1c7   : > { %v1388_v3 = vpop.f32.mrf.mxu3 }
 0x1c8   : > { %v2118_v27 = vpop.eup %2117  ;;  %v988_v45 = vmul.f32 1.442695, %v878_v51  ;;  %v990_v24 = vmul.f32 1.442695, %v879_v54  ;;  %v2674_v25 = vadd.f32 %v1388_v3, %v1299_v26 }
 0x1c9   : > { %v2120_v60 = vpop.eup %2119 }
 0x1ca   : > { %2121 = vpow2.f32 %v988_v45  ;;  %v2676_v42 = vadd.f32 %v2120_v60, %v2118_v27 }
 0x1cb   : > { %2123 = vpow2.f32 %v990_v24 }
 0x1cd   : > { %v810_v59 = vpop.xlane.xlu0 %809 }
 0x1ce   : > { %v1301_v58 = vpop.f32.mrf.mxu2  ;;  %v880_v0 = vsub.f32 %v2558_v23, %v810_v59  ;;  %v881_v17 = vsub.f32 %v2560_v30, %v810_v59 }
 0x1cf   : > { %v1390_v18 = vpop.f32.mrf.mxu3 }
 0x1d0   : > { %v2122_v13 = vpop.eup %2121  ;;  %v2679_v22 = vadd.f32 %v1390_v18, %v1301_v58  ;;  %v992_v29 = vmul.f32 1.442695, %v880_v0  ;;  %v994_v43 = vmul.f32 1.442695, %v881_v17 }
 0x1d1   : > { %v2124_v5 = vpop.eup %2123  ;;  %v1174_v33 = vpack.c.bf16 %v2122_v13, %v2118_v27 }
 0x1d2   : > { %v1175_v28 = vpack.c.bf16 %v2124_v5, %v2120_v60  ;;  %v2682_v61 = vadd.f32 %v2124_v5, %v2122_v13  ;;  %2125 = vpow2.f32 %v992_v29 }
 0x1d3   : > { %1343 = vmatmul.bf16.gmra.mxu2 %v1174_v33  ;;  %2127 = vpow2.f32 %v994_v43 }
 0x1d4   : > { %1432 = vmatmul.bf16.gmra.mxu3 %v1175_v28 }
 0x1d5   : > { %v813_v40 = vpop.xlane.xlu1 %812 }
 0x1d6   : > { %v882_v47 = vsub.f32 %v2566_v52, %v813_v40  ;;  %v883_v41 = vsub.f32 %v2568_v53, %v813_v40  ;;  %v1304_v48 = vpop.f32.mrf.mxu2 }
 0x1d7   : > { %v1393_v23 = vpop.f32.mrf.mxu3 }
 0x1d8   : > { %v996_v44 = vmul.f32 1.442695, %v882_v47  ;;  %v998_v51 = vmul.f32 1.442695, %v883_v41  ;;  %v2686_v54 = vadd.f32 %v1393_v23, %v1304_v48  ;;  %v2688_v26 = vpop.eup %2125 }
 0x1d9   : > { %v2692_v45 = vpop.eup %2127 }
 0x1da   : > { %2129 = vpow2.f32 %v996_v44 }
 0x1db   : > { %2131 = vpow2.f32 %v998_v51 }
 0x1dd   : > { %v816_v30 = vpop.xlane.xlu2 %815 }
 0x1de   : > { %v884_v3 = vsub.f32 %v2578_v38, %v816_v30  ;;  %v885_v27 = vsub.f32 %v2580_v39, %v816_v30  ;;  %v1306_v52 = vpop.f32.mrf.mxu2 }
 0x1df   : > { %v1395_v53 = vpop.f32.mrf.mxu3 }
 0x1e0   : > { %v2130_v24 = vpop.eup %2129  ;;  %v1000_v60 = vmul.f32 1.442695, %v884_v3  ;;  %v1002_v59 = vmul.f32 1.442695, %v885_v27  ;;  %v2694_v58 = vadd.f32 %v1395_v53, %v1306_v52 }
 0x1e1   : > { %v2132_v18 = vpop.eup %2131  ;;  %v1176_v13 = vpack.c.bf16 %v2130_v24, %v2688_v26 }
 0x1e2   : > { %2133 = vpow2.f32 %v1000_v60  ;;  %v1177_v0 = vpack.c.bf16 %v2132_v18, %v2692_v45  ;;  %v2698_v5 = vadd.f32 %v2132_v18, %v2130_v24 }
 0x1e3   : > { %2135 = vpow2.f32 %v1002_v59  ;;  %1348 = vmatmul.bf16.gmra.mxu2 %v1176_v13 }
 0x1e4   : > { %1437 = vmatmul.bf16.gmra.mxu3 %v1177_v0 }
 0x1e5   : > { %v819_v38 = vpop.xlane.xlu0 %818 }
 0x1e6   : > { %v886_v39 = vsub.f32 %v2586_v1, %v819_v38  ;;  %v887_v17 = vsub.f32 %v2590_v34, %v819_v38  ;;  %v1309_v33 = vpop.f32.mrf.mxu2 }
 0x1e7   : > { %v1398_v28 = vpop.f32.mrf.mxu3 }
 0x1e8   : > { %v2134_v29 = vpop.eup %2133  ;;  %v1004_v43 = vmul.f32 1.442695, %v886_v39  ;;  %v1006_v40 = vmul.f32 1.442695, %v887_v17  ;;  %v2702_v47 = vadd.f32 %v1398_v28, %v1309_v33 }
 0x1e9   : > { %v2136_v41 = vpop.eup %2135 }
 0x1ea   : > { %2137 = vpow2.f32 %v1004_v43  ;;  %v1102_v48 = vadd.f32 %v2136_v41, %v2134_v29 }
 0x1eb   : > { %2139 = vpow2.f32 %v1006_v40 }
 0x1ec   : > { %1103 = vadd.xlane.f32.xlu0 %v1102_v48 }
 0x1ed   : > { %v822_v23 = vpop.xlane.xlu1 %821 }
 0x1ee   : > { %v888_v44 = vsub.f32 %v2606_v7, %v822_v23  ;;  %v889_v51 = vsub.f32 %v2608_v8, %v822_v23  ;;  %v1311_v1 = vpop.f32.mrf.mxu2 }
 0x1ef   : > { %v1400_v30 = vpop.f32.mrf.mxu3 }
 0x1f0   : > { %v2138_v34 = vpop.eup %2137  ;;  %v1008_v3 = vmul.f32 1.442695, %v888_v44  ;;  %v1010_v27 = vmul.f32 1.442695, %v889_v51  ;;  %v2706_v52 = vadd.f32 %v1400_v30, %v1311_v1 }
 0x1f1   : > { %v2140_v53 = vpop.eup %2139  ;;  %v1178_v24 = vpack.c.bf16 %v2138_v34, %v2134_v29 }
 0x1f2   : > { %2141 = vpow2.f32 %v1008_v3  ;;  %v1179_v60 = vpack.c.bf16 %v2140_v53, %v2136_v41 }
 0x1f3   : > { %2143 = vpow2.f32 %v1010_v27  ;;  %1353 = vmatmul.bf16.gmra.mxu2 %v1178_v24 }
 0x1f4   : > { %1442 = vmatmul.bf16.gmra.mxu3 %v1179_v60 }
 0x1f5   : > { %v825_v59 = vpop.xlane.xlu2 %824 }
 0x1f6   : > { %v890_v18 = vsub.f32 %v2614_v49, %v825_v59  ;;  %v891_v7 = vsub.f32 %v2616_v20, %v825_v59  ;;  %v2710_v8 = vpop.f32.mrf.mxu2 }
 0x1f7   : > { %v2712_v13 = vpop.f32.mrf.mxu3 }
 0x1f8   : > { %v2142_v0 = vpop.eup %2141  ;;  %v1012_v38 = vmul.f32 1.442695, %v890_v18  ;;  %v1014_v39 = vmul.f32 1.442695, %v891_v7 }
 0x1f9   : > { %v2144_v17 = vpop.eup %2143 }
 0x1fa   : > { %2145 = vpow2.f32 %v1012_v38  ;;  %v1108_v33 = vadd.f32 %v2144_v17, %v2142_v0 }
 0x1fb   : > { %2147 = vpow2.f32 %v1014_v39 }
 0x1fc   : > { %1109 = vadd.xlane.f32.xlu2 %v1108_v33 }
 0x1fd   : > { %v828_v28 = vpop.xlane.xlu0 %827 }
 0x1fe   : > { %v892_v29 = vsub.f32 %v2622_v9, %v828_v28  ;;  %v893_v43 = vsub.f32 %v2624_v46, %v828_v28  ;;  %v2716_v49 = vpop.f32.mrf.mxu2  ;;  %v1105_v28 = vadd.f32 %v2140_v53, %v2138_v34 }
 0x1ff   : > { %v2718_v20 = vpop.f32.mrf.mxu3 }
 0x200   : > { %v2146_v40 = vpop.eup %2145  ;;  %v1016_v41 = vmul.f32 1.442695, %v892_v29  ;;  %v1018_v48 = vmul.f32 1.442695, %v893_v43 }
 0x201   : > { %v2148_v23 = vpop.eup %2147  ;;  %v1180_v44 = vpack.c.bf16 %v2146_v40, %v2142_v0 }
 0x202   : > { %2149 = vpow2.f32 %v1016_v41  ;;  %v1181_v51 = vpack.c.bf16 %v2148_v23, %v2144_v17  ;;  %v1111_v1 = vadd.f32 %v2148_v23, %v2146_v40  ;;  %v1068_v40 = vpop.xlane.xlu2 %1067  ;;  %v1096_v23 = vadd.f32 %v2692_v45, %v2688_v26 }
 0x203   : > { %2151 = vpow2.f32 %v1018_v48  ;;  %1358 = vmatmul.bf16.gmra.mxu2 %v1180_v44 }
 0x204   : > { %1447 = vmatmul.bf16.gmra.mxu3 %v1181_v51  ;;  %1112 = vadd.xlane.f32.xlu0 %v1111_v1 }
 0x205   : > { %v831_v30 = vpop.xlane.xlu1 %830  ;;  %v1062_v0 = vpop.xlane.xlu0 %1061 }
 0x206   : > { %v894_v9 = vsub.f32 %v2630_v56, %v831_v30  ;;  %v895_v46 = vsub.f32 %v2632_v57, %v831_v30  ;;  %v1319_v3 = vpop.f32.mrf.mxu2 }
 0x207   : > { %v1408_v27 = vpop.f32.mrf.mxu3 }
 0x208   : > { %v2150_v24 = vpop.eup %2149  ;;  %v1020_v60 = vmul.f32 1.442695, %v894_v9  ;;  %v1022_v59 = vmul.f32 1.442695, %v895_v46 }
 0x209   : > { %v2152_v18 = vpop.eup %2151 }
 0x20a   : > { %2153 = vpow2.f32 %v1020_v60  ;;  %v1114_v7 = vadd.f32 %v2152_v18, %v2150_v24  ;;  %v1059_v60 = vpop.xlane.xlu2 %1058 }
 0x20b   : > { %2155 = vpow2.f32 %v1022_v59 }
 0x20c   : > { %1052 = vadd.xlane.f32.xlu0 %v2574_v6  ;;  %1115 = vadd.xlane.f32.xlu1 %v1114_v7  ;;  %2157 = vrcp.f32 %v1068_v40 }
 0x20d   : > { %v1071_v6 = vpop.xlane.xlu0 %1070  ;;  %v1065_v48 = vpop.xlane.xlu1 %1064 }
 0x20e   : > { %v1321_v38 = vpop.f32.mrf.mxu2  ;;  %2159 = vrcp.f32 %v1071_v6 }
 0x20f   : > { %v1410_v39 = vpop.f32.mrf.mxu3  ;;  %2161 = vrcp.f32 %v1065_v48 }
 0x210   : > { %v2154_v17 = vpop.eup %2153  ;;  %2163 = vrcp.f32 %v1062_v0  ;;  %v1411_v26 = vadd.f32 %v1410_v39, %v1321_v38 }
 0x211   : > { %v2156_v33 = vpop.eup %2155  ;;  %v1182_v56 = vpack.c.bf16 %v2154_v17, %v2150_v24 }
 0x212   : > { %v1183_v57 = vpack.c.bf16 %v2156_v33, %v2152_v18  ;;  %v1117_v29 = vadd.f32 %v2156_v33, %v2154_v17  ;;  %v2158_v44 = vpop.eup %2157 }
 0x213   : > { %1363 = vmatmul.bf16.gmra.mxu2 %v1182_v56 }
 0x214   : > { %1043 = vadd.xlane.f32.xlu0 %v2544_v35  ;;  %1106 = vadd.xlane.f32.xlu1 %v1105_v28  ;;  %v2160_v1 = vpop.eup %2159 }
 0x215   : > { %1452 = vmatmul.bf16.gmra.mxu3 %v1183_v57  ;;  %1118 = vadd.xlane.f32.xlu2 %v1117_v29  ;;  %v1056_v30 = vpop.xlane.xlu1 %1055  ;;  %v2162_v24 = vpop.eup %2161 }
 0x216   : > { %v1324_v43 = vpop.f32.mrf.mxu2  ;;  %v2164_v45 = vpop.eup %2163  ;;  %2165 = vrcp.f32 %v1056_v30  ;;  %v1471_v59 = vmul.f32 %v2162_v24, %v1411_v26 }
 0x217   : > { %v1413_v41 = vpop.f32.mrf.mxu3  ;;  %2167 = vrcp.f32 %v1059_v60 }
 0x218   : > { %v1414_v35 = vadd.f32 %v1413_v41, %v1324_v43 }
 0x21a   : > { %v1472_v9 = vmul.f32 %v2158_v44, %v1414_v35 }
 0x21c   : > { %1094 = vadd.xlane.f32.xlu0 %v2682_v61  ;;  %1097 = vadd.xlane.f32.xlu1 %v1096_v23 }
 0x21d   : > { %1049 = vadd.xlane.f32.xlu2 %v2564_v32  ;;  %v1409_v32 = vadd.f32 %v1408_v27, %v1319_v3  ;;  %v1406_v3 = vadd.f32 %v2718_v20, %v2716_v49 }
 0x21e   : > { %v1326_v34 = vpop.f32.mrf.mxu2 }
 0x21f   : > { %v1415_v53 = vpop.f32.mrf.mxu3  ;;  %v1470_v17 = vmul.f32 %v2164_v45, %v1409_v32 }
 0x220   : > { %v1416_v51 = vadd.f32 %v1415_v53, %v1326_v34 }
 0x221   : > { %v1496_v38 = vpack.c.bf16 %v1471_v59, %v1470_v17 }
 0x222   : > { %v1473_v46 = vmul.f32 %v2160_v1, %v1416_v51 }
 0x223   : > { %v1553_v39 = vsel %vm509_vm0, %v1496_v38, 0 }
 0x224   : > { %1085 = vadd.xlane.f32.xlu0 %v2664_v21  ;;  %1046 = vadd.xlane.f32.xlu1 %v2554_v15  ;;  %v1497_v61 = vpack.c.bf16 %v1473_v46, %v1472_v9  ;;  %v2166_v21 = vpop.eup %2165  ;;  %v1404_v15 = vadd.f32 %v2712_v13, %v2710_v8 }
 0x225   : > { %1100 = vadd.xlane.f32.xlu2 %v2698_v5  ;;  %v2168_v5 = vpop.eup %2167 }
 0x226   : > { %v1329_v18 = vpop.f32.mrf.mxu2  ;;  %v1556_v7 = vsel %vm509_vm0, %v1497_v61, 0  ;;  %v1468_v56 = vmul.f32 %v2166_v21, %v1404_v15  ;;  %v1469_v29 = vmul.f32 %v2168_v5, %v1406_v3 }
 0x227   : > { %v1418_v0 = vpop.f32.mrf.mxu3  ;;  %1582 = vmatpush.bf16.xpose.msrb.mxu0 %v1556_v7 }
 0x228   : > { %v2732_v33 = vadd.f32 %v1418_v0, %v1329_v18  ;;  %v1495_v8 = vpack.c.bf16 %v1469_v29, %v1468_v56 }
 0x22c   : > { %1034 = vadd.xlane.f32.xlu0 %v2514_v62  ;;  %1037 = vadd.xlane.f32.xlu1 %v2524_v12  ;;  %v1550_v12 = vsel %vm509_vm0, %v1495_v8, 0 }
 0x22d   : > { %1091 = vadd.xlane.f32.xlu2 %v2676_v42 }
 0x22e   : > { %v1331_v27 = vpop.f32.mrf.mxu2 }
 0x22f   : > { %v1420_v28 = vpop.f32.mrf.mxu3  ;;  %1583 = vmatpush.bf16.xpose.msrb.mxu0 %v1553_v39 }
 0x230   : > { %v2742_v57 = vadd.f32 %v1420_v28, %v1331_v27 }
 0x234   : > { %1025 = vadd.xlane.f32.xlu0 %v2484_v63  ;;  %1088 = vadd.xlane.f32.xlu1 %v2670_v36 }
 0x235   : > { %1040 = vadd.xlane.f32.xlu2 %v2534_v31 }
 0x236   : > { %v1334_v62 = vpop.f32.mrf.mxu2 }
 0x237   : > { %v1423_v42 = vpop.f32.mrf.mxu3  ;;  %1584 = vmatpush.bf16.xpose.msrb.mxu0 %v1550_v12 }
 0x238   : > { %v2748_v13 = vadd.f32 %v1423_v42, %v1334_v62 }
 0x23c   : > { %1076 = vadd.xlane.f32.xlu0 %v2646_v11  ;;  %1079 = vadd.xlane.f32.xlu1 %v2652_v50 }
 0x23d   : > { %1031 = vadd.xlane.f32.xlu2 %v2504_v37 }
 0x23e   : > { %v1336_v49 = vpop.f32.mrf.mxu2 }
 0x23f   : > { %v1425_v20 = vpop.f32.mrf.mxu3 }
 0x240   : > { %v2753_v63 = vadd.f32 %v1425_v20, %v1336_v49 }
 0x244   : > { %1028 = vadd.xlane.f32.xlu1 %v2494_v14 }
 0x245   : > { %1082 = vadd.xlane.f32.xlu2 %v2658_v4 }
 0x246   : > { %v1339_v31 = vpop.f32.mrf.mxu2 }
 0x247   : > { %v1428_v36 = vpop.f32.mrf.mxu3 }
 0x248   : > { %v2757_v43 = vadd.f32 %v1428_v36, %v1339_v31 }
 0x24d   : > { %1073 = vadd.xlane.f32.xlu2 %v2640_v16 }
 0x24e   : > { %v1341_v40 = vpop.f32.mrf.mxu2 }
 0x24f   : > { %v1430_v11 = vpop.f32.mrf.mxu3 }
 0x250   : > { %v2760_v41 = vadd.f32 %v1430_v11, %v1341_v40 }
 0x256   : > { %v1344_v50 = vpop.f32.mrf.mxu2 }
 0x257   : > { %v1433_v37 = vpop.f32.mrf.mxu3 }
 0x258   : > { %v2762_v6 = vadd.f32 %v1433_v37, %v1344_v50 }
 0x25e   : > { %v1346_v48 = vpop.f32.mrf.mxu2 }
 0x25f   : > { %v1435_v23 = vpop.f32.mrf.mxu3  ;;  %v2766_v44 = vpop.xlane.xlu0 %1103 }
 0x260   : > { %v2764_v35 = vadd.f32 %v1435_v23, %v1346_v48 }
 0x266   : > { %v1349_v14 = vpop.f32.mrf.mxu2 }
 0x267   : > { %v1438_v4 = vpop.f32.mrf.mxu3 }
 0x268   : > { %v1439_v34 = vadd.f32 %v1438_v4, %v1349_v14 }
 0x26e   : > { %v1351_v53 = vpop.f32.mrf.mxu2 }
 0x26f   : > { %v1440_v51 = vpop.f32.mrf.mxu3  ;;  %v1110_v24 = vpop.xlane.xlu2 %1109 }
 0x270   : > { %v1441_v16 = vadd.f32 %v1440_v51, %v1351_v53 }
 0x276   : > { %v2768_v1 = vpop.f32.mrf.mxu2 }
 0x277   : > { %v2770_v30 = vpop.f32.mrf.mxu3  ;;  %v1113_v9 = vpop.xlane.xlu0 %1112 }
 0x27e   : > { %v2772_v46 = vpop.f32.mrf.mxu2 }
 0x27f   : > { %v2774_v60 = vpop.f32.mrf.mxu3  ;;  %v1053_v26 = vpop.xlane.xlu0 %1052 }
 0x280   : > { %v1116_v61 = vpop.xlane.xlu1 %1115  ;;  %2169 = vrcp.f32 %v1053_v26 }
 0x286   : > { %v1359_v45 = vpop.f32.mrf.mxu2  ;;  %v2170_v5 = vpop.eup %2169 }
 0x287   : > { %v1448_v32 = vpop.f32.mrf.mxu3  ;;  %v1044_v7 = vpop.xlane.xlu0 %1043  ;;  %v1467_v29 = vmul.f32 %v2170_v5, %v2706_v52 }
 0x288   : > { %v1119_v59 = vpop.xlane.xlu2 %1118  ;;  %v1107_v18 = vpop.xlane.xlu1 %1106 }
 0x28e   : > { %v1361_v0 = vpop.f32.mrf.mxu2 }
 0x28f   : > { %v1450_v17 = vpop.f32.mrf.mxu3  ;;  %v1095_v15 = vpop.xlane.xlu0 %1094 }
 0x290   : > { %v1050_v38 = vpop.xlane.xlu2 %1049  ;;  %v1098_v21 = vpop.xlane.xlu1 %1097 }
 0x291   : > { %2171 = vrcp.f32 %v1050_v38 }
 0x292   : > { %2173 = vrcp.f32 %v1098_v21 }
 0x293   : > { %2175 = vrcp.f32 %v1044_v7 }
 0x296   : > { %v1364_v3 = vpop.f32.mrf.mxu2 }
 0x297   : > { %v2172_v27 = vpop.eup %2171  ;;  %v1086_v20 = vpop.xlane.xlu0 %1085 }
 0x298   : > { %v1453_v39 = vpop.f32.mrf.mxu3  ;;  %v1101_v56 = vpop.xlane.xlu2 %1100  ;;  %v1466_v28 = vmul.f32 %v2172_v27, %v2702_v47 }
 0x299   : > { %2177 = vrcp.f32 %v1101_v56  ;;  %v1047_v8 = vpop.xlane.xlu1 %1046  ;;  %v2174_v42 = vpop.eup %2173  ;;  %v1454_v40 = vadd.f32 %v1453_v39, %v1364_v3 }
 0x29a   : > { %2179 = vrcp.f32 %v1047_v8  ;;  %v1494_v62 = vpack.c.bf16 %v1467_v29, %v1466_v28  ;;  %v2176_v49 = vpop.eup %2175  ;;  %v2779_v50 = vmul.f32 %v2174_v42, %v1439_v34  ;;  %v1444_v29 = vadd.f32 %v2770_v30, %v2768_v1 }
 0x29b   : > { %2181 = vrcp.f32 %v1116_v61  ;;  %v1464_v4 = vmul.f32 %v2176_v49, %v2686_v54 }
 0x29c   : > { %2183 = vrcp.f32 %v1119_v59  ;;  %v1547_v12 = vsel %vm509_vm0, %v1494_v62, 0 }
 0x29d   : > { %1585 = vmatpush.bf16.xpose.msrb.mxu0 %v1547_v12  ;;  %2185 = vrcp.f32 %v1095_v15 }
 0x29e   : > { %v1366_v31 = vpop.f32.mrf.mxu2  ;;  %2187 = vrcp.f32 %v1113_v9  ;;  %v1451_v9 = vadd.f32 %v1450_v17, %v1361_v0 }
 0x29f   : > { %v2178_v36 = vpop.eup %2177  ;;  %v1035_v0 = vpop.xlane.xlu0 %1034 }
 0x2a0   : > { %v2180_v11 = vpop.eup %2179  ;;  %v1455_v47 = vpop.f32.mrf.mxu3  ;;  %v2781_v37 = vmul.f32 %v2178_v36, %v1441_v16  ;;  %v1449_v16 = vadd.f32 %v1448_v32, %v1359_v45 }
 0x2a1   : > { %v1092_v52 = vpop.xlane.xlu2 %1091  ;;  %v2182_v48 = vpop.eup %2181  ;;  %v1456_v23 = vadd.f32 %v1455_v47, %v1366_v31  ;;  %v1465_v53 = vmul.f32 %v2180_v11, %v2694_v58 }
 0x2a2   : > { %2189 = vrcp.f32 %v1092_v52  ;;  %v1038_v14 = vpop.xlane.xlu1 %1037  ;;  %v2184_v51 = vpop.eup %2183  ;;  %v1502_v26 = vpack.c.bf16 %v2781_v37, %v2779_v50  ;;  %v1488_v61 = vmul.f32 %v2182_v48, %v1454_v40 }
 0x2a3   : > { %2191 = vrcp.f32 %v1110_v24  ;;  %v1489_v59 = vmul.f32 %v2184_v51, %v1456_v23  ;;  %v1493_v34 = vpack.c.bf16 %v1465_v53, %v1464_v4  ;;  %v2186_v7 = vpop.eup %2185 }
 0x2a4   : > { %2193 = vrcp.f32 %v2766_v44  ;;  %v2188_v15 = vpop.eup %2187  ;;  %v2794_v44 = vmul.f32 %v2186_v7, %v2764_v35 }
 0x2a5   : > { %v1544_v38 = vsel %vm509_vm0, %v1493_v34, 0  ;;  %v1505_v21 = vpack.c.bf16 %v1489_v59, %v1488_v61  ;;  %2195 = vrcp.f32 %v1107_v18  ;;  %v1487_v58 = vmul.f32 %v2188_v15, %v1451_v9 }
 0x2a6   : > { %1586 = vmatpush.bf16.xpose.msrb.mxu0 %v1544_v38  ;;  %2197 = vrcp.f32 %v1038_v14  ;;  %v1571_v34 = vsel %vm509_vm0, %v1502_v26, 0 }
 0x2a7   : > { %v1580_v24 = vsel %vm509_vm0, %v1505_v21, 0  ;;  %2199 = vrcp.f32 %v1086_v20 }
 0x2a8   : > { %v2190_v54 = vpop.eup %2189  ;;  %1601 = vmatpush.bf16.xpose.msrb.mxu1 %v1580_v24 }
 0x2a9   : > { %v2192_v5 = vpop.eup %2191  ;;  %v1041_v17 = vpop.xlane.xlu2 %1040  ;;  %v2791_v3 = vmul.f32 %v2190_v54, %v2762_v6  ;;  %v1446_v6 = vadd.f32 %v2774_v60, %v2772_v46 }
 0x2aa   : > { %v1486_v45 = vmul.f32 %v2192_v5, %v1449_v16  ;;  %2201 = vrcp.f32 %v1041_v17  ;;  %v1089_v32 = vpop.xlane.xlu1 %1088  ;;  %v2194_v27 = vpop.eup %2193 }
 0x2ab   : > { %2203 = vrcp.f32 %v1089_v32  ;;  %v1501_v18 = vpack.c.bf16 %v2794_v44, %v2791_v3  ;;  %v2196_v56 = vpop.eup %2195  ;;  %v1484_v36 = vmul.f32 %v2194_v27, %v1444_v29  ;;  %v1026_v46 = vpop.xlane.xlu0 %1025  ;;  %v1512_v44 = vld [vmem:[%s2844_s15 + $0x10] sm:$0xff] }
 0x2ac   : > { %v1504_v39 = vpack.c.bf16 %v1487_v58, %v1486_v45  ;;  %v2198_v28 = vpop.eup %2197  ;;  %2205 = vrcp.f32 %v1035_v0  ;;  %v1485_v12 = vmul.f32 %v2196_v56, %v1446_v6  ;;  %v2004_v0 = vld [vmem:[%s2880_s4 + $0x8] sm:$0xff]  ;;  %v1516_v56 = vld [vmem:[%s2844_s15 + $0x30] sm:$0xff] }
 0x2ad   : > { %v2200_v8 = vpop.eup %2199  ;;  %v1462_v20 = vmul.f32 %v2198_v28, %v2674_v25  ;;  %v1568_v37 = vsel %vm509_vm0, %v1501_v18, 0  ;;  %v1514_v18 = vld [vmem:[%s2844_s15 + $0x20] sm:$0xff]  ;;  %v1511_v28 = vld [vmem:[%s2844_s15 + $0x8] sm:$0xff] }
 0x2ae   : > { %v1577_v62 = vsel %vm509_vm0, %v1504_v39, 0  ;;  %v1478_v1 = vmul.f32 %v2200_v8, %v2757_v43  ;;  %v1503_v11 = vpack.c.bf16 %v1485_v12, %v1484_v36  ;;  %v1517_v36 = vld [vmem:[%s2844_s15 + $0x38] sm:$0xff] }
 0x2b0   : > { %v2202_v35 = vpop.eup %2201  ;;  %1602 = vmatpush.bf16.xpose.msrb.mxu1 %v1577_v62  ;;  %v1574_v25 = vsel %vm509_vm0, %v1503_v11, 0  ;;  %v1513_v62 = vld [vmem:[%s2844_s15 + $0x18] sm:$0xff] }
 0x2b1   : > { %v2204_v42 = vpop.eup %2203  ;;  %v1032_v49 = vpop.xlane.xlu2 %1031  ;;  %v1463_v31 = vmul.f32 %v2202_v35, %v2679_v22 }
 0x2b2   : > { %2207 = vrcp.f32 %v1032_v49  ;;  %v1080_v40 = vpop.xlane.xlu1 %1079  ;;  %v1479_v30 = vmul.f32 %v2204_v42, %v2760_v41  ;;  %v2206_v48 = vpop.eup %2205  ;;  %v1515_v49 = vld [vmem:[%s2844_s15 + $0x28] sm:$0xff] }
 0x2b3   : > { %v1492_v60 = vpack.c.bf16 %v1463_v31, %v1462_v20  ;;  %2209 = vrcp.f32 %v1080_v40  ;;  %v1461_v43 = vmul.f32 %v2206_v48, %v2668_v10  ;;  %v1077_v53 = vpop.xlane.xlu0 %1076 }
 0x2b4   : > { %v1500_v47 = vpack.c.bf16 %v1479_v30, %v1478_v1  ;;  %2211 = vrcp.f32 %v1026_v46 }
 0x2b5   : > { %v1541_v52 = vsel %vm509_vm0, %v1492_v60, 0 }
 0x2b6   : > { %1587 = vmatpush.bf16.xpose.msrb.mxu0 %v1541_v52  ;;  %v1565_v26 = vsel %vm509_vm0, %v1500_v47, 0 }
 0x2b8   : > { %v2208_v23 = vpop.eup %2207  ;;  %1603 = vmatpush.bf16.xpose.msrb.mxu1 %v1574_v25 }
 0x2b9   : > { %v1083_v22 = vpop.xlane.xlu2 %1082  ;;  %v1460_v14 = vmul.f32 %v2208_v23, %v2662_v19  ;;  %v2210_v9 = vpop.eup %2209 }
 0x2ba   : > { %2213 = vrcp.f32 %v1083_v22  ;;  %v1029_v41 = vpop.xlane.xlu1 %1028  ;;  %v2212_v61 = vpop.eup %2211  ;;  %v1476_v10 = vmul.f32 %v2210_v9, %v2748_v13 }
 0x2bb   : > { %2215 = vrcp.f32 %v1029_v41  ;;  %v1491_v4 = vpack.c.bf16 %v1461_v43, %v1460_v14  ;;  %v1458_v38 = vmul.f32 %v2212_v61, %v2650_v2 }
 0x2bc   : > { %2217 = vrcp.f32 %v1077_v53 }
 0x2bd   : > { %v1538_v51 = vsel %vm509_vm0, %v1491_v4, 0 }
 0x2be   : > { %1588 = vmatpush.bf16.xpose.msrb.mxu0 %v1538_v51 }
 0x2c0   : > { %v2214_v59 = vpop.eup %2213  ;;  %1604 = vmatpush.bf16.xpose.msrb.mxu1 %v1571_v34 }
 0x2c1   : > { %v2216_v19 = vpop.eup %2215  ;;  %v1074_v7 = vpop.xlane.xlu2 %1073  ;;  %v1477_v16 = vmul.f32 %v2214_v59, %v2753_v63 }
 0x2c2   : > { %2219 = vrcp.f32 %v1074_v7  ;;  %v1459_v21 = vmul.f32 %v2216_v19, %v2656_v55  ;;  %v2218_v58 = vpop.eup %2217  ;;  %v2003_v55 = vld [vmem:[%s2880_s4] sm:$0xff] }
 0x2c3   : > { %v1499_v15 = vpack.c.bf16 %v1477_v16, %v1476_v10  ;;  %v1475_v2 = vmul.f32 %v2218_v58, %v2742_v57  ;;  %v1510_v57 = vld [vmem:[%s2844_s15] sm:$0xff] }
 0x2c4   : > { %v1490_v54 = vpack.c.bf16 %v1459_v21, %v1458_v38 }
 0x2c5   : > { %v1562_v5 = vsel %vm509_vm0, %v1499_v15, 0 }
 0x2c6   : > { %v1535_v24 = vsel %vm509_vm0, %v1490_v54, 0 }
 0x2c7   : > { %1589 = vmatpush.bf16.xpose.msrb.mxu0 %v1535_v24 }
 0x2c8   : > { %v2220_v50 = vpop.eup %2219  ;;  %1605 = vmatpush.bf16.xpose.msrb.mxu1 %v1568_v37 }
 0x2c9   : > { %v1474_v13 = vmul.f32 %v2220_v50, %v2732_v33 }
 0x2cb   : > { %v1498_v63 = vpack.c.bf16 %v1475_v2, %v1474_v13 }
 0x2cd   : > { %v1559_v33 = vsel %vm509_vm0, %v1498_v63, 0 }
 0x2ce   : > { %1956 = vmatmul.msk.bf16.vlgmr.msrb.gmra.mxu0 %vm509_vm0, %v2003_v55 }
 0x2d0   : > { %1606 = vmatpush.bf16.xpose.msrb.mxu1 %v1565_v26 }
 0x2d8   : > { %1607 = vmatpush.bf16.xpose.msrb.mxu1 %v1562_v5 }
 0x2de   : > { %1957 = vmatmul.msk.bf16.gmra.mxu0 %vm509_vm0, %v2004_v0 }
 0x2e0   : > { %1608 = vmatpush.bf16.xpose.msrb.mxu1 %v1559_v33 }
 0x2e7   : > { %1958 = vmatmul.msk.bf16.vlgmr.msrb.gmra.mxu1 %vm509_vm0, %v2003_v55 }
 0x2f7   : > { %1959 = vmatmul.msk.bf16.gmra.mxu1 %vm509_vm0, %v2004_v0 }
 0x34b   : > { %v1591_v17 = vpop.f32.mrf.mxu0 }
 0x34c   : > { %v1592_v3 = vadd.f32 %v1591_v17, %v1510_v57 }
 0x34e   : > { %1620 = vst [vmem:[%s2850_s22] sm:$0xff] %v1592_v3 }
 0x353   : > { %v1593_v45 = vpop.f32.mrf.mxu0 }
 0x354   : > { %v1594_v32 = vadd.f32 %v1593_v45, %v1512_v44 }
 0x356   : > { %1622 = vst [vmem:[%s2850_s22 + $0x10] sm:$0xff] %v1594_v32 }
 0x35b   : > { %v1596_v27 = vpop.f32.mrf.mxu0 }
 0x35c   : > { %v1597_v39 = vadd.f32 %v1596_v27, %v1514_v18 }
 0x35e   : > { %1624 = vst [vmem:[%s2850_s22 + $0x20] sm:$0xff] %v1597_v39 }
 0x363   : > { %v1598_v29 = vpop.f32.mrf.mxu0 }
 0x364   : > { %v1599_v6 = vadd.f32 %v1598_v29, %v1516_v56  ;;  %v1610_v8 = vpop.f32.mrf.mxu1 }
 0x365   : > { %v1611_v35 = vadd.f32 %v1610_v8, %v1511_v28 }
 0x366   : > { %1626 = vst [vmem:[%s2850_s22 + $0x30] sm:$0xff] %v1599_v6 }
 0x367   : > { %1621 = vst [vmem:[%s2850_s22 + $0x8] sm:$0xff] %v1611_v35 }
 0x36c   : > { %v1612_v12 = vpop.f32.mrf.mxu1 }
 0x36d   : > { %v1613_v42 = vadd.f32 %v1612_v12, %v1513_v62 }
 0x36f   : > { %1623 = vst [vmem:[%s2850_s22 + $0x18] sm:$0xff] %v1613_v42 }
 0x374   : > { %v1615_v20 = vpop.f32.mrf.mxu1 }
 0x375   : > { %v1616_v31 = vadd.f32 %v1615_v20, %v1515_v49 }
 0x377   : > { %1625 = vst [vmem:[%s2850_s22 + $0x28] sm:$0xff] %v1616_v31 }
 0x37c   : > { %v1617_v40 = vpop.f32.mrf.mxu1 }
 0x37d   : > { %v1618_v1 = vadd.f32 %v1617_v40, %v1517_v36 }
 0x37f   : > { %1627 = vst [vmem:[%s2850_s22 + $0x38] sm:$0xff] %v1618_v1 }
 0x380 PF: > { %s15_s20 = sadd.s32 1, %s2243_s20   ;;  %s2882_s18 = smov %s2239_s19 }
 0x381   : > { %p12_p5 = scmp.ge.s32.totalorder %s15_s20, 4   ;;  %s2883_s19 = smov %s2885_s21 }
 0x383   :  { %14 = sbr.rel (!%p12_p5) target bundleno = 2 (0x2), region = 79 }

</bundles_post_ra>
